<compile_context>
chip_gen: v5e
topology: v5e:2x2
jax: 0.10.0
libtpu: 0.0.40
codegen_flags: <defaults>
</compile_context>

<pallas_src>
import numpy as np
import jax
import jax.numpy as jnp
from jax.experimental import pallas as pl
from jax.experimental.pallas import tpu as pltpu

# ---- small, self-consistent shapes ------------------------------------------
N, CIN, H, W = 2, 4, 16, 16   # batch, channels, spatial
COUT = CIN                    # identity shortcut (use_1x1conv=False)
K = 3                         # conv kernel size
EPS = 1e-5                    # PyTorch BatchNorm default eps

# ---- kernel layout constants --------------------------------------------------
R = CIN * N                   # 8 slab rows: row = ci*N + n  (channel-major)
L = H * W                     # 256 lanes  : lane = y*W + x  (unpadded flat spatial)
TAPW = K * K * CIN            # 36 weight columns per conv stage
INV_CNT = 1.0 / float(N * H * W)   # BN divisor (training-mode batch statistics)


# ---- fused Pallas kernel ------------------------------------------------------
def _residual_kernel(x_ref, w_ref, bn_ref, o_ref):
    # x_ref : (R, L)  f32 VMEM   input slab, rows (ci, n), lanes y*W+x
    # w_ref : (R, 2*TAPW) f32    per-(stage, tap, sublane-roll) weight columns
    # bn_ref: (R, 4)  f32        [gamma1 | beta1 | gamma2 | beta2] per-row
    # o_ref : (R, L)  f32 VMEM   output slab, rows (co, n)
    x = x_ref[...]

    lane = jax.lax.broadcasted_iota(jnp.int32, (R, L), 1)
    col = lane % W                                     # x coordinate in the image
    row = jax.lax.broadcasted_iota(jnp.int32, (R, L), 0)
    is_even = (row % 2) == 0                           # batch row 0 of each channel

    # Per-tap validity masks (shared by both conv stages).  These zero exactly
    # the target pixels whose source lies outside the image -- which are also
    # exactly the lanes that the circular lane roll wraps into.
    tap_masks = {}
    for dy in (-1, 0, 1):
        for dx in (-1, 0, 1):
            conds = []
            if dy == 1:
                conds.append(lane < (H - 1) * W)
            if dy == -1:
                conds.append(lane >= W)
            if dx == 1:
                conds.append(col < W - 1)
            if dx == -1:
                conds.append(col >= 1)
            m = None
            for c in conds:
                m = c if m is None else jnp.logical_and(m, c)
            tap_masks[(dy, dx)] = m                    # None for the center tap

    def conv_bn_relu(s_in, stage):
        # ---- direct 3x3 conv: 9 lane rolls, 27 sublane rolls, 36 column FMAs ----
        acc = jnp.zeros((R, L), jnp.float32)
        for dy in (-1, 0, 1):
            for dx in (-1, 0, 1):
                t = (dy + 1) * K + (dx + 1)            # tap index, HWIO order
                s = dy * W + dx                        # flat spatial source offset
                shifted = pltpu.roll(s_in, shift=(-s) % L, axis=1) if s else s_in
                m = tap_masks[(dy, dx)]
                tap = shifted if m is None else jnp.where(m, shifted, 0.0)
                for r in range(CIN):                   # channel mix as sublane rolls
                    rolled = pltpu.roll(tap, shift=2 * r, axis=0) if r else tap
                    c = stage * TAPW + t * CIN + r
                    acc = acc + rolled * w_ref[:, c:c + 1]   # (8,1) column FMA
        # Conv bias is dropped: training-mode BN mean subtraction cancels it
        # exactly (biases remain in the JAX reference).

        # ---- fused training-mode BatchNorm + ReLU ----
        # Batch-partner combine (rows 2c and 2c+1 hold the same channel), then a
        # single lane reduction gives per-channel sum / sum-of-squares broadcast
        # to both rows of that channel.
        partner = jnp.where(is_even,
                            pltpu.roll(acc, shift=R - 1, axis=0),
                            pltpu.roll(acc, shift=1, axis=0))
        s1 = jnp.sum(acc + partner, axis=1, keepdims=True)                    # (8,1)
        s2 = jnp.sum(acc * acc + partner * partner, axis=1, keepdims=True)    # (8,1)
        mean = s1 * INV_CNT
        var = jnp.maximum(s2 * INV_CNT - mean * mean, 0.0)   # clamp f32 cancellation
        scale = bn_ref[:, 2 * stage:2 * stage + 1] * jax.lax.rsqrt(var + EPS)
        shift = bn_ref[:, 2 * stage + 1:2 * stage + 2] - mean * scale
        return jnp.maximum(acc * scale + shift, 0.0)         # BN as one FMA + relu

    y = conv_bn_relu(x, 0)
    y = conv_bn_relu(y, 1)
    # Y += X ; relu  (identity shortcut), single full-slab lane-dense store.
    o_ref[...] = jnp.maximum(y + x, 0.0)


# ---- one-time host-side parameter packing -------------------------------------
def pack_params(params):
    """Pack conv weights / BN affine params into the kernel's column layout."""
    def weight_cols(w):
        w = np.asarray(w, np.float32)                  # (K, K, CIN, COUT) HWIO
        wc = np.zeros((R, TAPW), np.float32)
        for ky in range(K):
            for kx in range(K):
                t = ky * K + kx
                for r in range(CIN):                   # sublane-roll amount 2*r
                    for co in range(COUT):
                        ci = (co - r) % CIN
                        wc[co * N:co * N + N, t * CIN + r] = w[ky, kx, ci, co]
        return wc

    wcols = np.concatenate([weight_cols(params["w1"]),
                            weight_cols(params["w2"])], axis=1)       # (8, 72)

    def per_row(v):
        return np.repeat(np.asarray(v, np.float32), N)[:, None]       # (8, 1)

    bnp = np.concatenate([per_row(params["g1"]), per_row(params["beta1"]),
                          per_row(params["g2"]), per_row(params["beta2"])],
                         axis=1)                                      # (8, 4)
    return jnp.asarray(wcols), jnp.asarray(bnp)


# ---- wrapper ------------------------------------------------------------------
@jax.jit
def residual_forward(x_nchw, wcols, bnp):
    x = x_nchw.astype(jnp.float32)
    # Single relayout: NCHW -> (CIN*N, H*W) slab, rows (ci, n), lanes y*W+x.
    xin = jnp.transpose(x, (1, 0, 2, 3)).reshape(R, L)

    vmem = pl.BlockSpec(memory_space=pltpu.MemorySpace.VMEM)
    out = pl.pallas_call(
        _residual_kernel,
        out_shape=jax.ShapeDtypeStruct((R, L), jnp.float32),
        in_specs=[vmem, vmem, vmem],
        out_specs=vmem,
    )(xin, wcols, bnp)

    # Single relayout back: (COUT*N, H*W) -> NCHW.
    return jnp.transpose(out.reshape(COUT, N, H, W), (1, 0, 2, 3))


# ---- pure-JAX reference (for verification) ------------------------------------
def residual_ref(x_nchw, p):
    x = jnp.transpose(x_nchw, (0, 2, 3, 1)).astype(jnp.float32)   # NHWC

    def conv(xin, w, b):
        return jax.lax.conv_general_dilated(
            xin, w, window_strides=(1, 1), padding="SAME",
            dimension_numbers=("NHWC", "HWIO", "NHWC"),
            precision=jax.lax.Precision.HIGHEST) + b

    def bn(y, g, beta):
        m = y.mean(axis=(0, 1, 2), keepdims=True)
        v = ((y - m) ** 2).mean(axis=(0, 1, 2), keepdims=True)
        return (y - m) * jax.lax.rsqrt(v + EPS) * g + beta

    y = jax.nn.relu(bn(conv(x, p["w1"], p["b1"]), p["g1"], p["beta1"]))
    y = jax.nn.relu(bn(conv(y, p["w2"], p["b2"]), p["g2"], p["beta2"]))
    y = jax.nn.relu(y + x)
    return jnp.transpose(y, (0, 3, 1, 2))


# ---- parameter init (deterministic, synthetic) ---------------------------------
def init_params(key):
    k1, k2, k3, k4 = jax.random.split(key, 4)
    return {
        "w1": 0.1 * jax.random.normal(k1, (K, K, CIN, COUT), jnp.float32),   # HWIO
        "b1": 0.01 * jax.random.normal(k2, (COUT,), jnp.float32),            # ref only
        "g1": jnp.ones((COUT,), jnp.float32),
        "beta1": jnp.zeros((COUT,), jnp.float32),
        "w2": 0.1 * jax.random.normal(k3, (K, K, COUT, COUT), jnp.float32),
        "b2": 0.01 * jax.random.normal(k4, (COUT,), jnp.float32),            # ref only
        "g2": jnp.ones((COUT,), jnp.float32),
        "beta2": jnp.zeros((COUT,), jnp.float32),
    }


if __name__ == "__main__":
    root = jax.random.PRNGKey(0)
    kx, kp = jax.random.split(root)
    x = jax.random.normal(kx, (N, CIN, H, W), jnp.float32)   # NCHW like PyTorch
    params = init_params(kp)

    wcols, bnp = pack_params(params)          # one-time host-side packing
    out = residual_forward(x, wcols, bnp)
    out = jax.block_until_ready(out)

    ref = residual_ref(x, params)
    assert out.shape == (N, COUT, H, W)
    err = float(jnp.max(jnp.abs(out - ref)))
    assert jnp.allclose(out, ref, atol=1e-3, rtol=1e-3), err

    print("KERNEL_OK")
</pallas_src>

<mosaic_0001>
module attributes {stable_mosaic.version = 11 : i64} {
  func.func @_residual_kernel(%arg0: memref<8x256xf32, #tpu.memory_space<vmem>>, %arg1: memref<8x72xf32, #tpu.memory_space<vmem>>, %arg2: memref<8x4xf32, #tpu.memory_space<vmem>>, %arg3: memref<8x256xf32, #tpu.memory_space<vmem>>) attributes {dimension_semantics = [], scalar_prefetch = 0 : i64, scratch_operands = 0 : i64, tpu.core_type = #tpu.core_type<tc>} {
    %c0 = arith.constant 0 : index
    %c0_0 = arith.constant 0 : index
    %0 = vector.load %arg0[%c0, %c0_0] : memref<8x256xf32, #tpu.memory_space<vmem>>, vector<8x256xf32>
    %1 = tpu.iota {dimensions = array<i32: 1>} : vector<8x256xi32>
    %c16_i32 = arith.constant 16 : i32
    %c0_i32 = arith.constant 0 : i32
    %2 = arith.cmpi eq, %c16_i32, %c0_i32 : i32
    %c1_i32 = arith.constant 1 : i32
    %3 = arith.select %2, %c1_i32, %c16_i32 : i32
    %4 = vector.broadcast %3 : i32 to vector<8x256xi32>
    %5 = arith.remsi %1, %4 : vector<8x256xi32>
    %c0_i32_1 = arith.constant 0 : i32
    %6 = vector.broadcast %c0_i32_1 : i32 to vector<8x256xi32>
    %7 = arith.cmpi ne, %5, %6 : vector<8x256xi32>
    %c0_i32_2 = arith.constant 0 : i32
    %8 = vector.broadcast %c0_i32_2 : i32 to vector<8x256xi32>
    %9 = arith.cmpi slt, %5, %8 : vector<8x256xi32>
    %c0_i32_3 = arith.constant 0 : i32
    %10 = arith.cmpi slt, %3, %c0_i32_3 : i32
    %11 = vector.broadcast %10 : i1 to vector<8x256xi1>
    %12 = vector.broadcast %11 : vector<8x256xi1> to vector<8x256xi1>
    %13 = arith.xori %9, %12 : vector<8x256xi1>
    %14 = arith.andi %13, %7 : vector<8x256xi1>
    %15 = vector.broadcast %3 : i32 to vector<8x256xi32>
    %16 = arith.addi %5, %15 : vector<8x256xi32>
    %17 = arith.select %14, %16, %5 : vector<8x256xi1>, vector<8x256xi32>
    %18 = tpu.iota {dimensions = array<i32: 0>} : vector<8x256xi32>
    %c2_i32 = arith.constant 2 : i32
    %c0_i32_4 = arith.constant 0 : i32
    %19 = arith.cmpi eq, %c2_i32, %c0_i32_4 : i32
    %c1_i32_5 = arith.constant 1 : i32
    %20 = arith.select %19, %c1_i32_5, %c2_i32 : i32
    %21 = vector.broadcast %20 : i32 to vector<8x256xi32>
    %22 = arith.remsi %18, %21 : vector<8x256xi32>
    %c0_i32_6 = arith.constant 0 : i32
    %23 = vector.broadcast %c0_i32_6 : i32 to vector<8x256xi32>
    %24 = arith.cmpi ne, %22, %23 : vector<8x256xi32>
    %c0_i32_7 = arith.constant 0 : i32
    %25 = vector.broadcast %c0_i32_7 : i32 to vector<8x256xi32>
    %26 = arith.cmpi slt, %22, %25 : vector<8x256xi32>
    %c0_i32_8 = arith.constant 0 : i32
    %27 = arith.cmpi slt, %20, %c0_i32_8 : i32
    %28 = vector.broadcast %27 : i1 to vector<8x256xi1>
    %29 = vector.broadcast %28 : vector<8x256xi1> to vector<8x256xi1>
    %30 = arith.xori %26, %29 : vector<8x256xi1>
    %31 = arith.andi %30, %24 : vector<8x256xi1>
    %32 = vector.broadcast %20 : i32 to vector<8x256xi32>
    %33 = arith.addi %22, %32 : vector<8x256xi32>
    %34 = arith.select %31, %33, %22 : vector<8x256xi1>, vector<8x256xi32>
    %c0_i32_9 = arith.constant 0 : i32
    %35 = vector.broadcast %c0_i32_9 : i32 to vector<8x256xi32>
    %36 = arith.cmpi eq, %34, %35 : vector<8x256xi32>
    %c16_i32_10 = arith.constant 16 : i32
    %37 = vector.broadcast %c16_i32_10 : i32 to vector<8x256xi32>
    %38 = arith.cmpi sge, %1, %37 : vector<8x256xi32>
    %c1_i32_11 = arith.constant 1 : i32
    %39 = vector.broadcast %c1_i32_11 : i32 to vector<8x256xi32>
    %40 = arith.cmpi sge, %17, %39 : vector<8x256xi32>
    %41 = arith.andi %38, %40 : vector<8x256xi1>
    %c16_i32_12 = arith.constant 16 : i32
    %42 = vector.broadcast %c16_i32_12 : i32 to vector<8x256xi32>
    %43 = arith.cmpi sge, %1, %42 : vector<8x256xi32>
    %c16_i32_13 = arith.constant 16 : i32
    %44 = vector.broadcast %c16_i32_13 : i32 to vector<8x256xi32>
    %45 = arith.cmpi sge, %1, %44 : vector<8x256xi32>
    %c15_i32 = arith.constant 15 : i32
    %46 = vector.broadcast %c15_i32 : i32 to vector<8x256xi32>
    %47 = arith.cmpi slt, %17, %46 : vector<8x256xi32>
    %48 = arith.andi %45, %47 : vector<8x256xi1>
    %c1_i32_14 = arith.constant 1 : i32
    %49 = vector.broadcast %c1_i32_14 : i32 to vector<8x256xi32>
    %50 = arith.cmpi sge, %17, %49 : vector<8x256xi32>
    %c15_i32_15 = arith.constant 15 : i32
    %51 = vector.broadcast %c15_i32_15 : i32 to vector<8x256xi32>
    %52 = arith.cmpi slt, %17, %51 : vector<8x256xi32>
    %c240_i32 = arith.constant 240 : i32
    %53 = vector.broadcast %c240_i32 : i32 to vector<8x256xi32>
    %54 = arith.cmpi slt, %1, %53 : vector<8x256xi32>
    %c1_i32_16 = arith.constant 1 : i32
    %55 = vector.broadcast %c1_i32_16 : i32 to vector<8x256xi32>
    %56 = arith.cmpi sge, %17, %55 : vector<8x256xi32>
    %57 = arith.andi %54, %56 : vector<8x256xi1>
    %c240_i32_17 = arith.constant 240 : i32
    %58 = vector.broadcast %c240_i32_17 : i32 to vector<8x256xi32>
    %59 = arith.cmpi slt, %1, %58 : vector<8x256xi32>
    %c240_i32_18 = arith.constant 240 : i32
    %60 = vector.broadcast %c240_i32_18 : i32 to vector<8x256xi32>
    %61 = arith.cmpi slt, %1, %60 : vector<8x256xi32>
    %c15_i32_19 = arith.constant 15 : i32
    %62 = vector.broadcast %c15_i32_19 : i32 to vector<8x256xi32>
    %63 = arith.cmpi slt, %17, %62 : vector<8x256xi32>
    %64 = arith.andi %61, %63 : vector<8x256xi1>
    %cst = arith.constant 0.000000e+00 : f32
    %65 = vector.broadcast %cst : f32 to vector<8x256xf32>
    %c17_i32 = arith.constant 17 : i32
    %66 = tpu.dynamic_rotate %0 by %c17_i32 dim 1 : vector<8x256xf32>, i32 -> vector<8x256xf32>
    %cst_20 = arith.constant 0.000000e+00 : f32
    %67 = vector.broadcast %cst_20 : f32 to vector<8x256xf32>
    %68 = arith.select %41, %66, %67 : vector<8x256xi1>, vector<8x256xf32>
    %c0_21 = arith.constant 0 : index
    %c0_22 = arith.constant 0 : index
    %69 = vector.load %arg1[%c0_21, %c0_22] : memref<8x72xf32, #tpu.memory_space<vmem>>, vector<8x1xf32>
    %70 = vector.broadcast %69 : vector<8x1xf32> to vector<8x256xf32>
    %71 = arith.mulf %68, %70 : vector<8x256xf32>
    %72 = arith.addf %65, %71 : vector<8x256xf32>
    %c2_i32_23 = arith.constant 2 : i32
    %73 = tpu.dynamic_rotate %68 by %c2_i32_23 dim 0 : vector<8x256xf32>, i32 -> vector<8x256xf32>
    %c0_24 = arith.constant 0 : index
    %c1 = arith.constant 1 : index
    %74 = vector.load %arg1[%c0_24, %c1] : memref<8x72xf32, #tpu.memory_space<vmem>>, vector<8x1xf32>
    %75 = vector.broadcast %74 : vector<8x1xf32> to vector<8x256xf32>
    %76 = arith.mulf %73, %75 : vector<8x256xf32>
    %77 = arith.addf %72, %76 : vector<8x256xf32>
    %c4_i32 = arith.constant 4 : i32
    %78 = tpu.dynamic_rotate %68 by %c4_i32 dim 0 : vector<8x256xf32>, i32 -> vector<8x256xf32>
    %c0_25 = arith.constant 0 : index
    %c2 = arith.constant 2 : index
    %79 = vector.load %arg1[%c0_25, %c2] : memref<8x72xf32, #tpu.memory_space<vmem>>, vector<8x1xf32>
    %80 = vector.broadcast %79 : vector<8x1xf32> to vector<8x256xf32>
    %81 = arith.mulf %78, %80 : vector<8x256xf32>
    %82 = arith.addf %77, %81 : vector<8x256xf32>
    %c6_i32 = arith.constant 6 : i32
    %83 = tpu.dynamic_rotate %68 by %c6_i32 dim 0 : vector<8x256xf32>, i32 -> vector<8x256xf32>
    %c0_26 = arith.constant 0 : index
    %c3 = arith.constant 3 : index
    %84 = vector.load %arg1[%c0_26, %c3] : memref<8x72xf32, #tpu.memory_space<vmem>>, vector<8x1xf32>
    %85 = vector.broadcast %84 : vector<8x1xf32> to vector<8x256xf32>
    %86 = arith.mulf %83, %85 : vector<8x256xf32>
    %87 = arith.addf %82, %86 : vector<8x256xf32>
    %c16_i32_27 = arith.constant 16 : i32
    %88 = tpu.dynamic_rotate %0 by %c16_i32_27 dim 1 : vector<8x256xf32>, i32 -> vector<8x256xf32>
    %cst_28 = arith.constant 0.000000e+00 : f32
    %89 = vector.broadcast %cst_28 : f32 to vector<8x256xf32>
    %90 = arith.select %43, %88, %89 : vector<8x256xi1>, vector<8x256xf32>
    %c0_29 = arith.constant 0 : index
    %c4 = arith.constant 4 : index
    %91 = vector.load %arg1[%c0_29, %c4] : memref<8x72xf32, #tpu.memory_space<vmem>>, vector<8x1xf32>
    %92 = vector.broadcast %91 : vector<8x1xf32> to vector<8x256xf32>
    %93 = arith.mulf %90, %92 : vector<8x256xf32>
    %94 = arith.addf %87, %93 : vector<8x256xf32>
    %c2_i32_30 = arith.constant 2 : i32
    %95 = tpu.dynamic_rotate %90 by %c2_i32_30 dim 0 : vector<8x256xf32>, i32 -> vector<8x256xf32>
    %c0_31 = arith.constant 0 : index
    %c5 = arith.constant 5 : index
    %96 = vector.load %arg1[%c0_31, %c5] : memref<8x72xf32, #tpu.memory_space<vmem>>, vector<8x1xf32>
    %97 = vector.broadcast %96 : vector<8x1xf32> to vector<8x256xf32>
    %98 = arith.mulf %95, %97 : vector<8x256xf32>
    %99 = arith.addf %94, %98 : vector<8x256xf32>
    %c4_i32_32 = arith.constant 4 : i32
    %100 = tpu.dynamic_rotate %90 by %c4_i32_32 dim 0 : vector<8x256xf32>, i32 -> vector<8x256xf32>
    %c0_33 = arith.constant 0 : index
    %c6 = arith.constant 6 : index
    %101 = vector.load %arg1[%c0_33, %c6] : memref<8x72xf32, #tpu.memory_space<vmem>>, vector<8x1xf32>
    %102 = vector.broadcast %101 : vector<8x1xf32> to vector<8x256xf32>
    %103 = arith.mulf %100, %102 : vector<8x256xf32>
    %104 = arith.addf %99, %103 : vector<8x256xf32>
    %c6_i32_34 = arith.constant 6 : i32
    %105 = tpu.dynamic_rotate %90 by %c6_i32_34 dim 0 : vector<8x256xf32>, i32 -> vector<8x256xf32>
    %c0_35 = arith.constant 0 : index
    %c7 = arith.constant 7 : index
    %106 = vector.load %arg1[%c0_35, %c7] : memref<8x72xf32, #tpu.memory_space<vmem>>, vector<8x1xf32>
    %107 = vector.broadcast %106 : vector<8x1xf32> to vector<8x256xf32>
    %108 = arith.mulf %105, %107 : vector<8x256xf32>
    %109 = arith.addf %104, %108 : vector<8x256xf32>
    %c15_i32_36 = arith.constant 15 : i32
    %110 = tpu.dynamic_rotate %0 by %c15_i32_36 dim 1 : vector<8x256xf32>, i32 -> vector<8x256xf32>
    %cst_37 = arith.constant 0.000000e+00 : f32
    %111 = vector.broadcast %cst_37 : f32 to vector<8x256xf32>
    %112 = arith.select %48, %110, %111 : vector<8x256xi1>, vector<8x256xf32>
    %c0_38 = arith.constant 0 : index
    %c8 = arith.constant 8 : index
    %113 = vector.load %arg1[%c0_38, %c8] : memref<8x72xf32, #tpu.memory_space<vmem>>, vector<8x1xf32>
    %114 = vector.broadcast %113 : vector<8x1xf32> to vector<8x256xf32>
    %115 = arith.mulf %112, %114 : vector<8x256xf32>
    %116 = arith.addf %109, %115 : vector<8x256xf32>
    %c2_i32_39 = arith.constant 2 : i32
    %117 = tpu.dynamic_rotate %112 by %c2_i32_39 dim 0 : vector<8x256xf32>, i32 -> vector<8x256xf32>
    %c0_40 = arith.constant 0 : index
    %c9 = arith.constant 9 : index
    %118 = vector.load %arg1[%c0_40, %c9] : memref<8x72xf32, #tpu.memory_space<vmem>>, vector<8x1xf32>
    %119 = vector.broadcast %118 : vector<8x1xf32> to vector<8x256xf32>
    %120 = arith.mulf %117, %119 : vector<8x256xf32>
    %121 = arith.addf %116, %120 : vector<8x256xf32>
    %c4_i32_41 = arith.constant 4 : i32
    %122 = tpu.dynamic_rotate %112 by %c4_i32_41 dim 0 : vector<8x256xf32>, i32 -> vector<8x256xf32>
    %c0_42 = arith.constant 0 : index
    %c10 = arith.constant 10 : index
    %123 = vector.load %arg1[%c0_42, %c10] : memref<8x72xf32, #tpu.memory_space<vmem>>, vector<8x1xf32>
    %124 = vector.broadcast %123 : vector<8x1xf32> to vector<8x256xf32>
    %125 = arith.mulf %122, %124 : vector<8x256xf32>
    %126 = arith.addf %121, %125 : vector<8x256xf32>
    %c6_i32_43 = arith.constant 6 : i32
    %127 = tpu.dynamic_rotate %112 by %c6_i32_43 dim 0 : vector<8x256xf32>, i32 -> vector<8x256xf32>
    %c0_44 = arith.constant 0 : index
    %c11 = arith.constant 11 : index
    %128 = vector.load %arg1[%c0_44, %c11] : memref<8x72xf32, #tpu.memory_space<vmem>>, vector<8x1xf32>
    %129 = vector.broadcast %128 : vector<8x1xf32> to vector<8x256xf32>
    %130 = arith.mulf %127, %129 : vector<8x256xf32>
    %131 = arith.addf %126, %130 : vector<8x256xf32>
    %c1_i32_45 = arith.constant 1 : i32
    %132 = tpu.dynamic_rotate %0 by %c1_i32_45 dim 1 : vector<8x256xf32>, i32 -> vector<8x256xf32>
    %cst_46 = arith.constant 0.000000e+00 : f32
    %133 = vector.broadcast %cst_46 : f32 to vector<8x256xf32>
    %134 = arith.select %50, %132, %133 : vector<8x256xi1>, vector<8x256xf32>
    %c0_47 = arith.constant 0 : index
    %c12 = arith.constant 12 : index
    %135 = vector.load %arg1[%c0_47, %c12] : memref<8x72xf32, #tpu.memory_space<vmem>>, vector<8x1xf32>
    %136 = vector.broadcast %135 : vector<8x1xf32> to vector<8x256xf32>
    %137 = arith.mulf %134, %136 : vector<8x256xf32>
    %138 = arith.addf %131, %137 : vector<8x256xf32>
    %c2_i32_48 = arith.constant 2 : i32
    %139 = tpu.dynamic_rotate %134 by %c2_i32_48 dim 0 : vector<8x256xf32>, i32 -> vector<8x256xf32>
    %c0_49 = arith.constant 0 : index
    %c13 = arith.constant 13 : index
    %140 = vector.load %arg1[%c0_49, %c13] : memref<8x72xf32, #tpu.memory_space<vmem>>, vector<8x1xf32>
    %141 = vector.broadcast %140 : vector<8x1xf32> to vector<8x256xf32>
    %142 = arith.mulf %139, %141 : vector<8x256xf32>
    %143 = arith.addf %138, %142 : vector<8x256xf32>
    %c4_i32_50 = arith.constant 4 : i32
    %144 = tpu.dynamic_rotate %134 by %c4_i32_50 dim 0 : vector<8x256xf32>, i32 -> vector<8x256xf32>
    %c0_51 = arith.constant 0 : index
    %c14 = arith.constant 14 : index
    %145 = vector.load %arg1[%c0_51, %c14] : memref<8x72xf32, #tpu.memory_space<vmem>>, vector<8x1xf32>
    %146 = vector.broadcast %145 : vector<8x1xf32> to vector<8x256xf32>
    %147 = arith.mulf %144, %146 : vector<8x256xf32>
    %148 = arith.addf %143, %147 : vector<8x256xf32>
    %c6_i32_52 = arith.constant 6 : i32
    %149 = tpu.dynamic_rotate %134 by %c6_i32_52 dim 0 : vector<8x256xf32>, i32 -> vector<8x256xf32>
    %c0_53 = arith.constant 0 : index
    %c15 = arith.constant 15 : index
    %150 = vector.load %arg1[%c0_53, %c15] : memref<8x72xf32, #tpu.memory_space<vmem>>, vector<8x1xf32>
    %151 = vector.broadcast %150 : vector<8x1xf32> to vector<8x256xf32>
    %152 = arith.mulf %149, %151 : vector<8x256xf32>
    %153 = arith.addf %148, %152 : vector<8x256xf32>
    %c0_54 = arith.constant 0 : index
    %c16 = arith.constant 16 : index
    %154 = vector.load %arg1[%c0_54, %c16] : memref<8x72xf32, #tpu.memory_space<vmem>>, vector<8x1xf32>
    %155 = vector.broadcast %154 : vector<8x1xf32> to vector<8x256xf32>
    %156 = arith.mulf %0, %155 : vector<8x256xf32>
    %157 = arith.addf %153, %156 : vector<8x256xf32>
    %c2_i32_55 = arith.constant 2 : i32
    %158 = tpu.dynamic_rotate %0 by %c2_i32_55 dim 0 : vector<8x256xf32>, i32 -> vector<8x256xf32>
    %c0_56 = arith.constant 0 : index
    %c17 = arith.constant 17 : index
    %159 = vector.load %arg1[%c0_56, %c17] : memref<8x72xf32, #tpu.memory_space<vmem>>, vector<8x1xf32>
    %160 = vector.broadcast %159 : vector<8x1xf32> to vector<8x256xf32>
    %161 = arith.mulf %158, %160 : vector<8x256xf32>
    %162 = arith.addf %157, %161 : vector<8x256xf32>
    %c4_i32_57 = arith.constant 4 : i32
    %163 = tpu.dynamic_rotate %0 by %c4_i32_57 dim 0 : vector<8x256xf32>, i32 -> vector<8x256xf32>
    %c0_58 = arith.constant 0 : index
    %c18 = arith.constant 18 : index
    %164 = vector.load %arg1[%c0_58, %c18] : memref<8x72xf32, #tpu.memory_space<vmem>>, vector<8x1xf32>
    %165 = vector.broadcast %164 : vector<8x1xf32> to vector<8x256xf32>
    %166 = arith.mulf %163, %165 : vector<8x256xf32>
    %167 = arith.addf %162, %166 : vector<8x256xf32>
    %c6_i32_59 = arith.constant 6 : i32
    %168 = tpu.dynamic_rotate %0 by %c6_i32_59 dim 0 : vector<8x256xf32>, i32 -> vector<8x256xf32>
    %c0_60 = arith.constant 0 : index
    %c19 = arith.constant 19 : index
    %169 = vector.load %arg1[%c0_60, %c19] : memref<8x72xf32, #tpu.memory_space<vmem>>, vector<8x1xf32>
    %170 = vector.broadcast %169 : vector<8x1xf32> to vector<8x256xf32>
    %171 = arith.mulf %168, %170 : vector<8x256xf32>
    %172 = arith.addf %167, %171 : vector<8x256xf32>
    %c255_i32 = arith.constant 255 : i32
    %173 = tpu.dynamic_rotate %0 by %c255_i32 dim 1 : vector<8x256xf32>, i32 -> vector<8x256xf32>
    %cst_61 = arith.constant 0.000000e+00 : f32
    %174 = vector.broadcast %cst_61 : f32 to vector<8x256xf32>
    %175 = arith.select %52, %173, %174 : vector<8x256xi1>, vector<8x256xf32>
    %c0_62 = arith.constant 0 : index
    %c20 = arith.constant 20 : index
    %176 = vector.load %arg1[%c0_62, %c20] : memref<8x72xf32, #tpu.memory_space<vmem>>, vector<8x1xf32>
    %177 = vector.broadcast %176 : vector<8x1xf32> to vector<8x256xf32>
    %178 = arith.mulf %175, %177 : vector<8x256xf32>
    %179 = arith.addf %172, %178 : vector<8x256xf32>
    %c2_i32_63 = arith.constant 2 : i32
    %180 = tpu.dynamic_rotate %175 by %c2_i32_63 dim 0 : vector<8x256xf32>, i32 -> vector<8x256xf32>
    %c0_64 = arith.constant 0 : index
    %c21 = arith.constant 21 : index
    %181 = vector.load %arg1[%c0_64, %c21] : memref<8x72xf32, #tpu.memory_space<vmem>>, vector<8x1xf32>
    %182 = vector.broadcast %181 : vector<8x1xf32> to vector<8x256xf32>
    %183 = arith.mulf %180, %182 : vector<8x256xf32>
    %184 = arith.addf %179, %183 : vector<8x256xf32>
    %c4_i32_65 = arith.constant 4 : i32
    %185 = tpu.dynamic_rotate %175 by %c4_i32_65 dim 0 : vector<8x256xf32>, i32 -> vector<8x256xf32>
    %c0_66 = arith.constant 0 : index
    %c22 = arith.constant 22 : index
    %186 = vector.load %arg1[%c0_66, %c22] : memref<8x72xf32, #tpu.memory_space<vmem>>, vector<8x1xf32>
    %187 = vector.broadcast %186 : vector<8x1xf32> to vector<8x256xf32>
    %188 = arith.mulf %185, %187 : vector<8x256xf32>
    %189 = arith.addf %184, %188 : vector<8x256xf32>
    %c6_i32_67 = arith.constant 6 : i32
    %190 = tpu.dynamic_rotate %175 by %c6_i32_67 dim 0 : vector<8x256xf32>, i32 -> vector<8x256xf32>
    %c0_68 = arith.constant 0 : index
    %c23 = arith.constant 23 : index
    %191 = vector.load %arg1[%c0_68, %c23] : memref<8x72xf32, #tpu.memory_space<vmem>>, vector<8x1xf32>
    %192 = vector.broadcast %191 : vector<8x1xf32> to vector<8x256xf32>
    %193 = arith.mulf %190, %192 : vector<8x256xf32>
    %194 = arith.addf %189, %193 : vector<8x256xf32>
    %c241_i32 = arith.constant 241 : i32
    %195 = tpu.dynamic_rotate %0 by %c241_i32 dim 1 : vector<8x256xf32>, i32 -> vector<8x256xf32>
    %cst_69 = arith.constant 0.000000e+00 : f32
    %196 = vector.broadcast %cst_69 : f32 to vector<8x256xf32>
    %197 = arith.select %57, %195, %196 : vector<8x256xi1>, vector<8x256xf32>
    %c0_70 = arith.constant 0 : index
    %c24 = arith.constant 24 : index
    %198 = vector.load %arg1[%c0_70, %c24] : memref<8x72xf32, #tpu.memory_space<vmem>>, vector<8x1xf32>
    %199 = vector.broadcast %198 : vector<8x1xf32> to vector<8x256xf32>
    %200 = arith.mulf %197, %199 : vector<8x256xf32>
    %201 = arith.addf %194, %200 : vector<8x256xf32>
    %c2_i32_71 = arith.constant 2 : i32
    %202 = tpu.dynamic_rotate %197 by %c2_i32_71 dim 0 : vector<8x256xf32>, i32 -> vector<8x256xf32>
    %c0_72 = arith.constant 0 : index
    %c25 = arith.constant 25 : index
    %203 = vector.load %arg1[%c0_72, %c25] : memref<8x72xf32, #tpu.memory_space<vmem>>, vector<8x1xf32>
    %204 = vector.broadcast %203 : vector<8x1xf32> to vector<8x256xf32>
    %205 = arith.mulf %202, %204 : vector<8x256xf32>
    %206 = arith.addf %201, %205 : vector<8x256xf32>
    %c4_i32_73 = arith.constant 4 : i32
    %207 = tpu.dynamic_rotate %197 by %c4_i32_73 dim 0 : vector<8x256xf32>, i32 -> vector<8x256xf32>
    %c0_74 = arith.constant 0 : index
    %c26 = arith.constant 26 : index
    %208 = vector.load %arg1[%c0_74, %c26] : memref<8x72xf32, #tpu.memory_space<vmem>>, vector<8x1xf32>
    %209 = vector.broadcast %208 : vector<8x1xf32> to vector<8x256xf32>
    %210 = arith.mulf %207, %209 : vector<8x256xf32>
    %211 = arith.addf %206, %210 : vector<8x256xf32>
    %c6_i32_75 = arith.constant 6 : i32
    %212 = tpu.dynamic_rotate %197 by %c6_i32_75 dim 0 : vector<8x256xf32>, i32 -> vector<8x256xf32>
    %c0_76 = arith.constant 0 : index
    %c27 = arith.constant 27 : index
    %213 = vector.load %arg1[%c0_76, %c27] : memref<8x72xf32, #tpu.memory_space<vmem>>, vector<8x1xf32>
    %214 = vector.broadcast %213 : vector<8x1xf32> to vector<8x256xf32>
    %215 = arith.mulf %212, %214 : vector<8x256xf32>
    %216 = arith.addf %211, %215 : vector<8x256xf32>
    %c240_i32_77 = arith.constant 240 : i32
    %217 = tpu.dynamic_rotate %0 by %c240_i32_77 dim 1 : vector<8x256xf32>, i32 -> vector<8x256xf32>
    %cst_78 = arith.constant 0.000000e+00 : f32
    %218 = vector.broadcast %cst_78 : f32 to vector<8x256xf32>
    %219 = arith.select %59, %217, %218 : vector<8x256xi1>, vector<8x256xf32>
    %c0_79 = arith.constant 0 : index
    %c28 = arith.constant 28 : index
    %220 = vector.load %arg1[%c0_79, %c28] : memref<8x72xf32, #tpu.memory_space<vmem>>, vector<8x1xf32>
    %221 = vector.broadcast %220 : vector<8x1xf32> to vector<8x256xf32>
    %222 = arith.mulf %219, %221 : vector<8x256xf32>
    %223 = arith.addf %216, %222 : vector<8x256xf32>
    %c2_i32_80 = arith.constant 2 : i32
    %224 = tpu.dynamic_rotate %219 by %c2_i32_80 dim 0 : vector<8x256xf32>, i32 -> vector<8x256xf32>
    %c0_81 = arith.constant 0 : index
    %c29 = arith.constant 29 : index
    %225 = vector.load %arg1[%c0_81, %c29] : memref<8x72xf32, #tpu.memory_space<vmem>>, vector<8x1xf32>
    %226 = vector.broadcast %225 : vector<8x1xf32> to vector<8x256xf32>
    %227 = arith.mulf %224, %226 : vector<8x256xf32>
    %228 = arith.addf %223, %227 : vector<8x256xf32>
    %c4_i32_82 = arith.constant 4 : i32
    %229 = tpu.dynamic_rotate %219 by %c4_i32_82 dim 0 : vector<8x256xf32>, i32 -> vector<8x256xf32>
    %c0_83 = arith.constant 0 : index
    %c30 = arith.constant 30 : index
    %230 = vector.load %arg1[%c0_83, %c30] : memref<8x72xf32, #tpu.memory_space<vmem>>, vector<8x1xf32>
    %231 = vector.broadcast %230 : vector<8x1xf32> to vector<8x256xf32>
    %232 = arith.mulf %229, %231 : vector<8x256xf32>
    %233 = arith.addf %228, %232 : vector<8x256xf32>
    %c6_i32_84 = arith.constant 6 : i32
    %234 = tpu.dynamic_rotate %219 by %c6_i32_84 dim 0 : vector<8x256xf32>, i32 -> vector<8x256xf32>
    %c0_85 = arith.constant 0 : index
    %c31 = arith.constant 31 : index
    %235 = vector.load %arg1[%c0_85, %c31] : memref<8x72xf32, #tpu.memory_space<vmem>>, vector<8x1xf32>
    %236 = vector.broadcast %235 : vector<8x1xf32> to vector<8x256xf32>
    %237 = arith.mulf %234, %236 : vector<8x256xf32>
    %238 = arith.addf %233, %237 : vector<8x256xf32>
    %c239_i32 = arith.constant 239 : i32
    %239 = tpu.dynamic_rotate %0 by %c239_i32 dim 1 : vector<8x256xf32>, i32 -> vector<8x256xf32>
    %cst_86 = arith.constant 0.000000e+00 : f32
    %240 = vector.broadcast %cst_86 : f32 to vector<8x256xf32>
    %241 = arith.select %64, %239, %240 : vector<8x256xi1>, vector<8x256xf32>
    %c0_87 = arith.constant 0 : index
    %c32 = arith.constant 32 : index
    %242 = vector.load %arg1[%c0_87, %c32] : memref<8x72xf32, #tpu.memory_space<vmem>>, vector<8x1xf32>
    %243 = vector.broadcast %242 : vector<8x1xf32> to vector<8x256xf32>
    %244 = arith.mulf %241, %243 : vector<8x256xf32>
    %245 = arith.addf %238, %244 : vector<8x256xf32>
    %c2_i32_88 = arith.constant 2 : i32
    %246 = tpu.dynamic_rotate %241 by %c2_i32_88 dim 0 : vector<8x256xf32>, i32 -> vector<8x256xf32>
    %c0_89 = arith.constant 0 : index
    %c33 = arith.constant 33 : index
    %247 = vector.load %arg1[%c0_89, %c33] : memref<8x72xf32, #tpu.memory_space<vmem>>, vector<8x1xf32>
    %248 = vector.broadcast %247 : vector<8x1xf32> to vector<8x256xf32>
    %249 = arith.mulf %246, %248 : vector<8x256xf32>
    %250 = arith.addf %245, %249 : vector<8x256xf32>
    %c4_i32_90 = arith.constant 4 : i32
    %251 = tpu.dynamic_rotate %241 by %c4_i32_90 dim 0 : vector<8x256xf32>, i32 -> vector<8x256xf32>
    %c0_91 = arith.constant 0 : index
    %c34 = arith.constant 34 : index
    %252 = vector.load %arg1[%c0_91, %c34] : memref<8x72xf32, #tpu.memory_space<vmem>>, vector<8x1xf32>
    %253 = vector.broadcast %252 : vector<8x1xf32> to vector<8x256xf32>
    %254 = arith.mulf %251, %253 : vector<8x256xf32>
    %255 = arith.addf %250, %254 : vector<8x256xf32>
    %c6_i32_92 = arith.constant 6 : i32
    %256 = tpu.dynamic_rotate %241 by %c6_i32_92 dim 0 : vector<8x256xf32>, i32 -> vector<8x256xf32>
    %c0_93 = arith.constant 0 : index
    %c35 = arith.constant 35 : index
    %257 = vector.load %arg1[%c0_93, %c35] : memref<8x72xf32, #tpu.memory_space<vmem>>, vector<8x1xf32>
    %258 = vector.broadcast %257 : vector<8x1xf32> to vector<8x256xf32>
    %259 = arith.mulf %256, %258 : vector<8x256xf32>
    %260 = arith.addf %255, %259 : vector<8x256xf32>
    %c7_i32 = arith.constant 7 : i32
    %261 = tpu.dynamic_rotate %260 by %c7_i32 dim 0 : vector<8x256xf32>, i32 -> vector<8x256xf32>
    %c1_i32_94 = arith.constant 1 : i32
    %262 = tpu.dynamic_rotate %260 by %c1_i32_94 dim 0 : vector<8x256xf32>, i32 -> vector<8x256xf32>
    %263 = arith.select %36, %261, %262 : vector<8x256xi1>, vector<8x256xf32>
    %264 = arith.addf %260, %263 : vector<8x256xf32>
    %cst_95 = arith.constant dense<0.000000e+00> : vector<8xf32>
    %265 = vector.multi_reduction <add>, %264, %cst_95 [1] : vector<8x256xf32> to vector<8xf32>
    %266 = vector.shape_cast %265 : vector<8xf32> to vector<8x1xf32>
    %267 = arith.mulf %260, %260 : vector<8x256xf32>
    %268 = arith.mulf %263, %263 : vector<8x256xf32>
    %269 = arith.addf %267, %268 : vector<8x256xf32>
    %cst_96 = arith.constant dense<0.000000e+00> : vector<8xf32>
    %270 = vector.multi_reduction <add>, %269, %cst_96 [1] : vector<8x256xf32> to vector<8xf32>
    %271 = vector.shape_cast %270 : vector<8xf32> to vector<8x1xf32>
    %cst_97 = arith.constant 0.001953125 : f32
    %272 = vector.broadcast %cst_97 : f32 to vector<8x1xf32>
    %273 = arith.mulf %266, %272 : vector<8x1xf32>
    %cst_98 = arith.constant 0.001953125 : f32
    %274 = vector.broadcast %cst_98 : f32 to vector<8x1xf32>
    %275 = arith.mulf %271, %274 : vector<8x1xf32>
    %276 = arith.mulf %273, %273 : vector<8x1xf32>
    %277 = arith.subf %275, %276 : vector<8x1xf32>
    %cst_99 = arith.constant 0.000000e+00 : f32
    %278 = vector.broadcast %cst_99 : f32 to vector<8x1xf32>
    %279 = arith.maximumf %277, %278 : vector<8x1xf32>
    %c0_100 = arith.constant 0 : index
    %c0_101 = arith.constant 0 : index
    %280 = vector.load %arg2[%c0_100, %c0_101] : memref<8x4xf32, #tpu.memory_space<vmem>>, vector<8x1xf32>
    %cst_102 = arith.constant 9.99999974E-6 : f32
    %281 = vector.broadcast %cst_102 : f32 to vector<8x1xf32>
    %282 = arith.addf %279, %281 : vector<8x1xf32>
    %283 = math.rsqrt %282 : vector<8x1xf32>
    %284 = arith.mulf %280, %283 : vector<8x1xf32>
    %c0_103 = arith.constant 0 : index
    %c1_104 = arith.constant 1 : index
    %285 = vector.load %arg2[%c0_103, %c1_104] : memref<8x4xf32, #tpu.memory_space<vmem>>, vector<8x1xf32>
    %286 = arith.mulf %273, %284 : vector<8x1xf32>
    %287 = arith.subf %285, %286 : vector<8x1xf32>
    %288 = vector.broadcast %284 : vector<8x1xf32> to vector<8x256xf32>
    %289 = arith.mulf %260, %288 : vector<8x256xf32>
    %290 = vector.broadcast %287 : vector<8x1xf32> to vector<8x256xf32>
    %291 = arith.addf %289, %290 : vector<8x256xf32>
    %cst_105 = arith.constant 0.000000e+00 : f32
    %292 = vector.broadcast %cst_105 : f32 to vector<8x256xf32>
    %293 = arith.maximumf %291, %292 : vector<8x256xf32>
    %cst_106 = arith.constant 0.000000e+00 : f32
    %294 = vector.broadcast %cst_106 : f32 to vector<8x256xf32>
    %c17_i32_107 = arith.constant 17 : i32
    %295 = tpu.dynamic_rotate %293 by %c17_i32_107 dim 1 : vector<8x256xf32>, i32 -> vector<8x256xf32>
    %cst_108 = arith.constant 0.000000e+00 : f32
    %296 = vector.broadcast %cst_108 : f32 to vector<8x256xf32>
    %297 = arith.select %41, %295, %296 : vector<8x256xi1>, vector<8x256xf32>
    %c0_109 = arith.constant 0 : index
    %c36 = arith.constant 36 : index
    %298 = vector.load %arg1[%c0_109, %c36] : memref<8x72xf32, #tpu.memory_space<vmem>>, vector<8x1xf32>
    %299 = vector.broadcast %298 : vector<8x1xf32> to vector<8x256xf32>
    %300 = arith.mulf %297, %299 : vector<8x256xf32>
    %301 = arith.addf %294, %300 : vector<8x256xf32>
    %c2_i32_110 = arith.constant 2 : i32
    %302 = tpu.dynamic_rotate %297 by %c2_i32_110 dim 0 : vector<8x256xf32>, i32 -> vector<8x256xf32>
    %c0_111 = arith.constant 0 : index
    %c37 = arith.constant 37 : index
    %303 = vector.load %arg1[%c0_111, %c37] : memref<8x72xf32, #tpu.memory_space<vmem>>, vector<8x1xf32>
    %304 = vector.broadcast %303 : vector<8x1xf32> to vector<8x256xf32>
    %305 = arith.mulf %302, %304 : vector<8x256xf32>
    %306 = arith.addf %301, %305 : vector<8x256xf32>
    %c4_i32_112 = arith.constant 4 : i32
    %307 = tpu.dynamic_rotate %297 by %c4_i32_112 dim 0 : vector<8x256xf32>, i32 -> vector<8x256xf32>
    %c0_113 = arith.constant 0 : index
    %c38 = arith.constant 38 : index
    %308 = vector.load %arg1[%c0_113, %c38] : memref<8x72xf32, #tpu.memory_space<vmem>>, vector<8x1xf32>
    %309 = vector.broadcast %308 : vector<8x1xf32> to vector<8x256xf32>
    %310 = arith.mulf %307, %309 : vector<8x256xf32>
    %311 = arith.addf %306, %310 : vector<8x256xf32>
    %c6_i32_114 = arith.constant 6 : i32
    %312 = tpu.dynamic_rotate %297 by %c6_i32_114 dim 0 : vector<8x256xf32>, i32 -> vector<8x256xf32>
    %c0_115 = arith.constant 0 : index
    %c39 = arith.constant 39 : index
    %313 = vector.load %arg1[%c0_115, %c39] : memref<8x72xf32, #tpu.memory_space<vmem>>, vector<8x1xf32>
    %314 = vector.broadcast %313 : vector<8x1xf32> to vector<8x256xf32>
    %315 = arith.mulf %312, %314 : vector<8x256xf32>
    %316 = arith.addf %311, %315 : vector<8x256xf32>
    %c16_i32_116 = arith.constant 16 : i32
    %317 = tpu.dynamic_rotate %293 by %c16_i32_116 dim 1 : vector<8x256xf32>, i32 -> vector<8x256xf32>
    %cst_117 = arith.constant 0.000000e+00 : f32
    %318 = vector.broadcast %cst_117 : f32 to vector<8x256xf32>
    %319 = arith.select %43, %317, %318 : vector<8x256xi1>, vector<8x256xf32>
    %c0_118 = arith.constant 0 : index
    %c40 = arith.constant 40 : index
    %320 = vector.load %arg1[%c0_118, %c40] : memref<8x72xf32, #tpu.memory_space<vmem>>, vector<8x1xf32>
    %321 = vector.broadcast %320 : vector<8x1xf32> to vector<8x256xf32>
    %322 = arith.mulf %319, %321 : vector<8x256xf32>
    %323 = arith.addf %316, %322 : vector<8x256xf32>
    %c2_i32_119 = arith.constant 2 : i32
    %324 = tpu.dynamic_rotate %319 by %c2_i32_119 dim 0 : vector<8x256xf32>, i32 -> vector<8x256xf32>
    %c0_120 = arith.constant 0 : index
    %c41 = arith.constant 41 : index
    %325 = vector.load %arg1[%c0_120, %c41] : memref<8x72xf32, #tpu.memory_space<vmem>>, vector<8x1xf32>
    %326 = vector.broadcast %325 : vector<8x1xf32> to vector<8x256xf32>
    %327 = arith.mulf %324, %326 : vector<8x256xf32>
    %328 = arith.addf %323, %327 : vector<8x256xf32>
    %c4_i32_121 = arith.constant 4 : i32
    %329 = tpu.dynamic_rotate %319 by %c4_i32_121 dim 0 : vector<8x256xf32>, i32 -> vector<8x256xf32>
    %c0_122 = arith.constant 0 : index
    %c42 = arith.constant 42 : index
    %330 = vector.load %arg1[%c0_122, %c42] : memref<8x72xf32, #tpu.memory_space<vmem>>, vector<8x1xf32>
    %331 = vector.broadcast %330 : vector<8x1xf32> to vector<8x256xf32>
    %332 = arith.mulf %329, %331 : vector<8x256xf32>
    %333 = arith.addf %328, %332 : vector<8x256xf32>
    %c6_i32_123 = arith.constant 6 : i32
    %334 = tpu.dynamic_rotate %319 by %c6_i32_123 dim 0 : vector<8x256xf32>, i32 -> vector<8x256xf32>
    %c0_124 = arith.constant 0 : index
    %c43 = arith.constant 43 : index
    %335 = vector.load %arg1[%c0_124, %c43] : memref<8x72xf32, #tpu.memory_space<vmem>>, vector<8x1xf32>
    %336 = vector.broadcast %335 : vector<8x1xf32> to vector<8x256xf32>
    %337 = arith.mulf %334, %336 : vector<8x256xf32>
    %338 = arith.addf %333, %337 : vector<8x256xf32>
    %c15_i32_125 = arith.constant 15 : i32
    %339 = tpu.dynamic_rotate %293 by %c15_i32_125 dim 1 : vector<8x256xf32>, i32 -> vector<8x256xf32>
    %cst_126 = arith.constant 0.000000e+00 : f32
    %340 = vector.broadcast %cst_126 : f32 to vector<8x256xf32>
    %341 = arith.select %48, %339, %340 : vector<8x256xi1>, vector<8x256xf32>
    %c0_127 = arith.constant 0 : index
    %c44 = arith.constant 44 : index
    %342 = vector.load %arg1[%c0_127, %c44] : memref<8x72xf32, #tpu.memory_space<vmem>>, vector<8x1xf32>
    %343 = vector.broadcast %342 : vector<8x1xf32> to vector<8x256xf32>
    %344 = arith.mulf %341, %343 : vector<8x256xf32>
    %345 = arith.addf %338, %344 : vector<8x256xf32>
    %c2_i32_128 = arith.constant 2 : i32
    %346 = tpu.dynamic_rotate %341 by %c2_i32_128 dim 0 : vector<8x256xf32>, i32 -> vector<8x256xf32>
    %c0_129 = arith.constant 0 : index
    %c45 = arith.constant 45 : index
    %347 = vector.load %arg1[%c0_129, %c45] : memref<8x72xf32, #tpu.memory_space<vmem>>, vector<8x1xf32>
    %348 = vector.broadcast %347 : vector<8x1xf32> to vector<8x256xf32>
    %349 = arith.mulf %346, %348 : vector<8x256xf32>
    %350 = arith.addf %345, %349 : vector<8x256xf32>
    %c4_i32_130 = arith.constant 4 : i32
    %351 = tpu.dynamic_rotate %341 by %c4_i32_130 dim 0 : vector<8x256xf32>, i32 -> vector<8x256xf32>
    %c0_131 = arith.constant 0 : index
    %c46 = arith.constant 46 : index
    %352 = vector.load %arg1[%c0_131, %c46] : memref<8x72xf32, #tpu.memory_space<vmem>>, vector<8x1xf32>
    %353 = vector.broadcast %352 : vector<8x1xf32> to vector<8x256xf32>
    %354 = arith.mulf %351, %353 : vector<8x256xf32>
    %355 = arith.addf %350, %354 : vector<8x256xf32>
    %c6_i32_132 = arith.constant 6 : i32
    %356 = tpu.dynamic_rotate %341 by %c6_i32_132 dim 0 : vector<8x256xf32>, i32 -> vector<8x256xf32>
    %c0_133 = arith.constant 0 : index
    %c47 = arith.constant 47 : index
    %357 = vector.load %arg1[%c0_133, %c47] : memref<8x72xf32, #tpu.memory_space<vmem>>, vector<8x1xf32>
    %358 = vector.broadcast %357 : vector<8x1xf32> to vector<8x256xf32>
    %359 = arith.mulf %356, %358 : vector<8x256xf32>
    %360 = arith.addf %355, %359 : vector<8x256xf32>
    %c1_i32_134 = arith.constant 1 : i32
    %361 = tpu.dynamic_rotate %293 by %c1_i32_134 dim 1 : vector<8x256xf32>, i32 -> vector<8x256xf32>
    %cst_135 = arith.constant 0.000000e+00 : f32
    %362 = vector.broadcast %cst_135 : f32 to vector<8x256xf32>
    %363 = arith.select %50, %361, %362 : vector<8x256xi1>, vector<8x256xf32>
    %c0_136 = arith.constant 0 : index
    %c48 = arith.constant 48 : index
    %364 = vector.load %arg1[%c0_136, %c48] : memref<8x72xf32, #tpu.memory_space<vmem>>, vector<8x1xf32>
    %365 = vector.broadcast %364 : vector<8x1xf32> to vector<8x256xf32>
    %366 = arith.mulf %363, %365 : vector<8x256xf32>
    %367 = arith.addf %360, %366 : vector<8x256xf32>
    %c2_i32_137 = arith.constant 2 : i32
    %368 = tpu.dynamic_rotate %363 by %c2_i32_137 dim 0 : vector<8x256xf32>, i32 -> vector<8x256xf32>
    %c0_138 = arith.constant 0 : index
    %c49 = arith.constant 49 : index
    %369 = vector.load %arg1[%c0_138, %c49] : memref<8x72xf32, #tpu.memory_space<vmem>>, vector<8x1xf32>
    %370 = vector.broadcast %369 : vector<8x1xf32> to vector<8x256xf32>
    %371 = arith.mulf %368, %370 : vector<8x256xf32>
    %372 = arith.addf %367, %371 : vector<8x256xf32>
    %c4_i32_139 = arith.constant 4 : i32
    %373 = tpu.dynamic_rotate %363 by %c4_i32_139 dim 0 : vector<8x256xf32>, i32 -> vector<8x256xf32>
    %c0_140 = arith.constant 0 : index
    %c50 = arith.constant 50 : index
    %374 = vector.load %arg1[%c0_140, %c50] : memref<8x72xf32, #tpu.memory_space<vmem>>, vector<8x1xf32>
    %375 = vector.broadcast %374 : vector<8x1xf32> to vector<8x256xf32>
    %376 = arith.mulf %373, %375 : vector<8x256xf32>
    %377 = arith.addf %372, %376 : vector<8x256xf32>
    %c6_i32_141 = arith.constant 6 : i32
    %378 = tpu.dynamic_rotate %363 by %c6_i32_141 dim 0 : vector<8x256xf32>, i32 -> vector<8x256xf32>
    %c0_142 = arith.constant 0 : index
    %c51 = arith.constant 51 : index
    %379 = vector.load %arg1[%c0_142, %c51] : memref<8x72xf32, #tpu.memory_space<vmem>>, vector<8x1xf32>
    %380 = vector.broadcast %379 : vector<8x1xf32> to vector<8x256xf32>
    %381 = arith.mulf %378, %380 : vector<8x256xf32>
    %382 = arith.addf %377, %381 : vector<8x256xf32>
    %c0_143 = arith.constant 0 : index
    %c52 = arith.constant 52 : index
    %383 = vector.load %arg1[%c0_143, %c52] : memref<8x72xf32, #tpu.memory_space<vmem>>, vector<8x1xf32>
    %384 = vector.broadcast %383 : vector<8x1xf32> to vector<8x256xf32>
    %385 = arith.mulf %293, %384 : vector<8x256xf32>
    %386 = arith.addf %382, %385 : vector<8x256xf32>
    %c2_i32_144 = arith.constant 2 : i32
    %387 = tpu.dynamic_rotate %293 by %c2_i32_144 dim 0 : vector<8x256xf32>, i32 -> vector<8x256xf32>
    %c0_145 = arith.constant 0 : index
    %c53 = arith.constant 53 : index
    %388 = vector.load %arg1[%c0_145, %c53] : memref<8x72xf32, #tpu.memory_space<vmem>>, vector<8x1xf32>
    %389 = vector.broadcast %388 : vector<8x1xf32> to vector<8x256xf32>
    %390 = arith.mulf %387, %389 : vector<8x256xf32>
    %391 = arith.addf %386, %390 : vector<8x256xf32>
    %c4_i32_146 = arith.constant 4 : i32
    %392 = tpu.dynamic_rotate %293 by %c4_i32_146 dim 0 : vector<8x256xf32>, i32 -> vector<8x256xf32>
    %c0_147 = arith.constant 0 : index
    %c54 = arith.constant 54 : index
    %393 = vector.load %arg1[%c0_147, %c54] : memref<8x72xf32, #tpu.memory_space<vmem>>, vector<8x1xf32>
    %394 = vector.broadcast %393 : vector<8x1xf32> to vector<8x256xf32>
    %395 = arith.mulf %392, %394 : vector<8x256xf32>
    %396 = arith.addf %391, %395 : vector<8x256xf32>
    %c6_i32_148 = arith.constant 6 : i32
    %397 = tpu.dynamic_rotate %293 by %c6_i32_148 dim 0 : vector<8x256xf32>, i32 -> vector<8x256xf32>
    %c0_149 = arith.constant 0 : index
    %c55 = arith.constant 55 : index
    %398 = vector.load %arg1[%c0_149, %c55] : memref<8x72xf32, #tpu.memory_space<vmem>>, vector<8x1xf32>
    %399 = vector.broadcast %398 : vector<8x1xf32> to vector<8x256xf32>
    %400 = arith.mulf %397, %399 : vector<8x256xf32>
    %401 = arith.addf %396, %400 : vector<8x256xf32>
    %c255_i32_150 = arith.constant 255 : i32
    %402 = tpu.dynamic_rotate %293 by %c255_i32_150 dim 1 : vector<8x256xf32>, i32 -> vector<8x256xf32>
    %cst_151 = arith.constant 0.000000e+00 : f32
    %403 = vector.broadcast %cst_151 : f32 to vector<8x256xf32>
    %404 = arith.select %52, %402, %403 : vector<8x256xi1>, vector<8x256xf32>
    %c0_152 = arith.constant 0 : index
    %c56 = arith.constant 56 : index
    %405 = vector.load %arg1[%c0_152, %c56] : memref<8x72xf32, #tpu.memory_space<vmem>>, vector<8x1xf32>
    %406 = vector.broadcast %405 : vector<8x1xf32> to vector<8x256xf32>
    %407 = arith.mulf %404, %406 : vector<8x256xf32>
    %408 = arith.addf %401, %407 : vector<8x256xf32>
    %c2_i32_153 = arith.constant 2 : i32
    %409 = tpu.dynamic_rotate %404 by %c2_i32_153 dim 0 : vector<8x256xf32>, i32 -> vector<8x256xf32>
    %c0_154 = arith.constant 0 : index
    %c57 = arith.constant 57 : index
    %410 = vector.load %arg1[%c0_154, %c57] : memref<8x72xf32, #tpu.memory_space<vmem>>, vector<8x1xf32>
    %411 = vector.broadcast %410 : vector<8x1xf32> to vector<8x256xf32>
    %412 = arith.mulf %409, %411 : vector<8x256xf32>
    %413 = arith.addf %408, %412 : vector<8x256xf32>
    %c4_i32_155 = arith.constant 4 : i32
    %414 = tpu.dynamic_rotate %404 by %c4_i32_155 dim 0 : vector<8x256xf32>, i32 -> vector<8x256xf32>
    %c0_156 = arith.constant 0 : index
    %c58 = arith.constant 58 : index
    %415 = vector.load %arg1[%c0_156, %c58] : memref<8x72xf32, #tpu.memory_space<vmem>>, vector<8x1xf32>
    %416 = vector.broadcast %415 : vector<8x1xf32> to vector<8x256xf32>
    %417 = arith.mulf %414, %416 : vector<8x256xf32>
    %418 = arith.addf %413, %417 : vector<8x256xf32>
    %c6_i32_157 = arith.constant 6 : i32
    %419 = tpu.dynamic_rotate %404 by %c6_i32_157 dim 0 : vector<8x256xf32>, i32 -> vector<8x256xf32>
    %c0_158 = arith.constant 0 : index
    %c59 = arith.constant 59 : index
    %420 = vector.load %arg1[%c0_158, %c59] : memref<8x72xf32, #tpu.memory_space<vmem>>, vector<8x1xf32>
    %421 = vector.broadcast %420 : vector<8x1xf32> to vector<8x256xf32>
    %422 = arith.mulf %419, %421 : vector<8x256xf32>
    %423 = arith.addf %418, %422 : vector<8x256xf32>
    %c241_i32_159 = arith.constant 241 : i32
    %424 = tpu.dynamic_rotate %293 by %c241_i32_159 dim 1 : vector<8x256xf32>, i32 -> vector<8x256xf32>
    %cst_160 = arith.constant 0.000000e+00 : f32
    %425 = vector.broadcast %cst_160 : f32 to vector<8x256xf32>
    %426 = arith.select %57, %424, %425 : vector<8x256xi1>, vector<8x256xf32>
    %c0_161 = arith.constant 0 : index
    %c60 = arith.constant 60 : index
    %427 = vector.load %arg1[%c0_161, %c60] : memref<8x72xf32, #tpu.memory_space<vmem>>, vector<8x1xf32>
    %428 = vector.broadcast %427 : vector<8x1xf32> to vector<8x256xf32>
    %429 = arith.mulf %426, %428 : vector<8x256xf32>
    %430 = arith.addf %423, %429 : vector<8x256xf32>
    %c2_i32_162 = arith.constant 2 : i32
    %431 = tpu.dynamic_rotate %426 by %c2_i32_162 dim 0 : vector<8x256xf32>, i32 -> vector<8x256xf32>
    %c0_163 = arith.constant 0 : index
    %c61 = arith.constant 61 : index
    %432 = vector.load %arg1[%c0_163, %c61] : memref<8x72xf32, #tpu.memory_space<vmem>>, vector<8x1xf32>
    %433 = vector.broadcast %432 : vector<8x1xf32> to vector<8x256xf32>
    %434 = arith.mulf %431, %433 : vector<8x256xf32>
    %435 = arith.addf %430, %434 : vector<8x256xf32>
    %c4_i32_164 = arith.constant 4 : i32
    %436 = tpu.dynamic_rotate %426 by %c4_i32_164 dim 0 : vector<8x256xf32>, i32 -> vector<8x256xf32>
    %c0_165 = arith.constant 0 : index
    %c62 = arith.constant 62 : index
    %437 = vector.load %arg1[%c0_165, %c62] : memref<8x72xf32, #tpu.memory_space<vmem>>, vector<8x1xf32>
    %438 = vector.broadcast %437 : vector<8x1xf32> to vector<8x256xf32>
    %439 = arith.mulf %436, %438 : vector<8x256xf32>
    %440 = arith.addf %435, %439 : vector<8x256xf32>
    %c6_i32_166 = arith.constant 6 : i32
    %441 = tpu.dynamic_rotate %426 by %c6_i32_166 dim 0 : vector<8x256xf32>, i32 -> vector<8x256xf32>
    %c0_167 = arith.constant 0 : index
    %c63 = arith.constant 63 : index
    %442 = vector.load %arg1[%c0_167, %c63] : memref<8x72xf32, #tpu.memory_space<vmem>>, vector<8x1xf32>
    %443 = vector.broadcast %442 : vector<8x1xf32> to vector<8x256xf32>
    %444 = arith.mulf %441, %443 : vector<8x256xf32>
    %445 = arith.addf %440, %444 : vector<8x256xf32>
    %c240_i32_168 = arith.constant 240 : i32
    %446 = tpu.dynamic_rotate %293 by %c240_i32_168 dim 1 : vector<8x256xf32>, i32 -> vector<8x256xf32>
    %cst_169 = arith.constant 0.000000e+00 : f32
    %447 = vector.broadcast %cst_169 : f32 to vector<8x256xf32>
    %448 = arith.select %59, %446, %447 : vector<8x256xi1>, vector<8x256xf32>
    %c0_170 = arith.constant 0 : index
    %c64 = arith.constant 64 : index
    %449 = vector.load %arg1[%c0_170, %c64] : memref<8x72xf32, #tpu.memory_space<vmem>>, vector<8x1xf32>
    %450 = vector.broadcast %449 : vector<8x1xf32> to vector<8x256xf32>
    %451 = arith.mulf %448, %450 : vector<8x256xf32>
    %452 = arith.addf %445, %451 : vector<8x256xf32>
    %c2_i32_171 = arith.constant 2 : i32
    %453 = tpu.dynamic_rotate %448 by %c2_i32_171 dim 0 : vector<8x256xf32>, i32 -> vector<8x256xf32>
    %c0_172 = arith.constant 0 : index
    %c65 = arith.constant 65 : index
    %454 = vector.load %arg1[%c0_172, %c65] : memref<8x72xf32, #tpu.memory_space<vmem>>, vector<8x1xf32>
    %455 = vector.broadcast %454 : vector<8x1xf32> to vector<8x256xf32>
    %456 = arith.mulf %453, %455 : vector<8x256xf32>
    %457 = arith.addf %452, %456 : vector<8x256xf32>
    %c4_i32_173 = arith.constant 4 : i32
    %458 = tpu.dynamic_rotate %448 by %c4_i32_173 dim 0 : vector<8x256xf32>, i32 -> vector<8x256xf32>
    %c0_174 = arith.constant 0 : index
    %c66 = arith.constant 66 : index
    %459 = vector.load %arg1[%c0_174, %c66] : memref<8x72xf32, #tpu.memory_space<vmem>>, vector<8x1xf32>
    %460 = vector.broadcast %459 : vector<8x1xf32> to vector<8x256xf32>
    %461 = arith.mulf %458, %460 : vector<8x256xf32>
    %462 = arith.addf %457, %461 : vector<8x256xf32>
    %c6_i32_175 = arith.constant 6 : i32
    %463 = tpu.dynamic_rotate %448 by %c6_i32_175 dim 0 : vector<8x256xf32>, i32 -> vector<8x256xf32>
    %c0_176 = arith.constant 0 : index
    %c67 = arith.constant 67 : index
    %464 = vector.load %arg1[%c0_176, %c67] : memref<8x72xf32, #tpu.memory_space<vmem>>, vector<8x1xf32>
    %465 = vector.broadcast %464 : vector<8x1xf32> to vector<8x256xf32>
    %466 = arith.mulf %463, %465 : vector<8x256xf32>
    %467 = arith.addf %462, %466 : vector<8x256xf32>
    %c239_i32_177 = arith.constant 239 : i32
    %468 = tpu.dynamic_rotate %293 by %c239_i32_177 dim 1 : vector<8x256xf32>, i32 -> vector<8x256xf32>
    %cst_178 = arith.constant 0.000000e+00 : f32
    %469 = vector.broadcast %cst_178 : f32 to vector<8x256xf32>
    %470 = arith.select %64, %468, %469 : vector<8x256xi1>, vector<8x256xf32>
    %c0_179 = arith.constant 0 : index
    %c68 = arith.constant 68 : index
    %471 = vector.load %arg1[%c0_179, %c68] : memref<8x72xf32, #tpu.memory_space<vmem>>, vector<8x1xf32>
    %472 = vector.broadcast %471 : vector<8x1xf32> to vector<8x256xf32>
    %473 = arith.mulf %470, %472 : vector<8x256xf32>
    %474 = arith.addf %467, %473 : vector<8x256xf32>
    %c2_i32_180 = arith.constant 2 : i32
    %475 = tpu.dynamic_rotate %470 by %c2_i32_180 dim 0 : vector<8x256xf32>, i32 -> vector<8x256xf32>
    %c0_181 = arith.constant 0 : index
    %c69 = arith.constant 69 : index
    %476 = vector.load %arg1[%c0_181, %c69] : memref<8x72xf32, #tpu.memory_space<vmem>>, vector<8x1xf32>
    %477 = vector.broadcast %476 : vector<8x1xf32> to vector<8x256xf32>
    %478 = arith.mulf %475, %477 : vector<8x256xf32>
    %479 = arith.addf %474, %478 : vector<8x256xf32>
    %c4_i32_182 = arith.constant 4 : i32
    %480 = tpu.dynamic_rotate %470 by %c4_i32_182 dim 0 : vector<8x256xf32>, i32 -> vector<8x256xf32>
    %c0_183 = arith.constant 0 : index
    %c70 = arith.constant 70 : index
    %481 = vector.load %arg1[%c0_183, %c70] : memref<8x72xf32, #tpu.memory_space<vmem>>, vector<8x1xf32>
    %482 = vector.broadcast %481 : vector<8x1xf32> to vector<8x256xf32>
    %483 = arith.mulf %480, %482 : vector<8x256xf32>
    %484 = arith.addf %479, %483 : vector<8x256xf32>
    %c6_i32_184 = arith.constant 6 : i32
    %485 = tpu.dynamic_rotate %470 by %c6_i32_184 dim 0 : vector<8x256xf32>, i32 -> vector<8x256xf32>
    %c0_185 = arith.constant 0 : index
    %c71 = arith.constant 71 : index
    %486 = vector.load %arg1[%c0_185, %c71] : memref<8x72xf32, #tpu.memory_space<vmem>>, vector<8x1xf32>
    %487 = vector.broadcast %486 : vector<8x1xf32> to vector<8x256xf32>
    %488 = arith.mulf %485, %487 : vector<8x256xf32>
    %489 = arith.addf %484, %488 : vector<8x256xf32>
    %c7_i32_186 = arith.constant 7 : i32
    %490 = tpu.dynamic_rotate %489 by %c7_i32_186 dim 0 : vector<8x256xf32>, i32 -> vector<8x256xf32>
    %c1_i32_187 = arith.constant 1 : i32
    %491 = tpu.dynamic_rotate %489 by %c1_i32_187 dim 0 : vector<8x256xf32>, i32 -> vector<8x256xf32>
    %492 = arith.select %36, %490, %491 : vector<8x256xi1>, vector<8x256xf32>
    %493 = arith.addf %489, %492 : vector<8x256xf32>
    %cst_188 = arith.constant dense<0.000000e+00> : vector<8xf32>
    %494 = vector.multi_reduction <add>, %493, %cst_188 [1] : vector<8x256xf32> to vector<8xf32>
    %495 = vector.shape_cast %494 : vector<8xf32> to vector<8x1xf32>
    %496 = arith.mulf %489, %489 : vector<8x256xf32>
    %497 = arith.mulf %492, %492 : vector<8x256xf32>
    %498 = arith.addf %496, %497 : vector<8x256xf32>
    %cst_189 = arith.constant dense<0.000000e+00> : vector<8xf32>
    %499 = vector.multi_reduction <add>, %498, %cst_189 [1] : vector<8x256xf32> to vector<8xf32>
    %500 = vector.shape_cast %499 : vector<8xf32> to vector<8x1xf32>
    %cst_190 = arith.constant 0.001953125 : f32
    %501 = vector.broadcast %cst_190 : f32 to vector<8x1xf32>
    %502 = arith.mulf %495, %501 : vector<8x1xf32>
    %cst_191 = arith.constant 0.001953125 : f32
    %503 = vector.broadcast %cst_191 : f32 to vector<8x1xf32>
    %504 = arith.mulf %500, %503 : vector<8x1xf32>
    %505 = arith.mulf %502, %502 : vector<8x1xf32>
    %506 = arith.subf %504, %505 : vector<8x1xf32>
    %cst_192 = arith.constant 0.000000e+00 : f32
    %507 = vector.broadcast %cst_192 : f32 to vector<8x1xf32>
    %508 = arith.maximumf %506, %507 : vector<8x1xf32>
    %c0_193 = arith.constant 0 : index
    %c2_194 = arith.constant 2 : index
    %509 = vector.load %arg2[%c0_193, %c2_194] : memref<8x4xf32, #tpu.memory_space<vmem>>, vector<8x1xf32>
    %cst_195 = arith.constant 9.99999974E-6 : f32
    %510 = vector.broadcast %cst_195 : f32 to vector<8x1xf32>
    %511 = arith.addf %508, %510 : vector<8x1xf32>
    %512 = math.rsqrt %511 : vector<8x1xf32>
    %513 = arith.mulf %509, %512 : vector<8x1xf32>
    %c0_196 = arith.constant 0 : index
    %c3_197 = arith.constant 3 : index
    %514 = vector.load %arg2[%c0_196, %c3_197] : memref<8x4xf32, #tpu.memory_space<vmem>>, vector<8x1xf32>
    %515 = arith.mulf %502, %513 : vector<8x1xf32>
    %516 = arith.subf %514, %515 : vector<8x1xf32>
    %517 = vector.broadcast %513 : vector<8x1xf32> to vector<8x256xf32>
    %518 = arith.mulf %489, %517 : vector<8x256xf32>
    %519 = vector.broadcast %516 : vector<8x1xf32> to vector<8x256xf32>
    %520 = arith.addf %518, %519 : vector<8x256xf32>
    %cst_198 = arith.constant 0.000000e+00 : f32
    %521 = vector.broadcast %cst_198 : f32 to vector<8x256xf32>
    %522 = arith.maximumf %520, %521 : vector<8x256xf32>
    %523 = arith.addf %522, %0 : vector<8x256xf32>
    %cst_199 = arith.constant 0.000000e+00 : f32
    %524 = vector.broadcast %cst_199 : f32 to vector<8x256xf32>
    %525 = arith.maximumf %523, %524 : vector<8x256xf32>
    %c0_200 = arith.constant 0 : index
    %c0_201 = arith.constant 0 : index
    %526 = vector.load %arg3[%c0_200, %c0_201] : memref<8x256xf32, #tpu.memory_space<vmem>>, vector<8x256xf32>
    tpu.vector_store %arg3[%c0_200, %c0_201], %525 {strides = array<i32>} : memref<8x256xf32, #tpu.memory_space<vmem>>, vector<8x256xf32>,
    return
  }
}

</mosaic_0001>

<bundles_post_ra>
// kernel: residual_forward.1
= control target key start
LH: loop header
LB: loop body
LE: loop exit
PB: predicated region body
PF: predicated region fallthrough
CT: control target
= control target key end

     0   :  { %v1188_v0 = vmov 0   ;;  %v1189_v3 = vmov 2   ;;  %s1190_s16 = smov 17   ;;  %v1191_v4 = vmov 5   ;;  %v1192_v6 = vmov 1   ;;  %s1194_s19 = smov 16   ;;  %s1862_s1 = inlined_call_operand.vmem [shape: f32[8,72], index: 1, kind: input, shape index: {}]   ;;  %s1863_s0 = inlined_call_operand.vmem [shape: f32[8,256], index: 0, kind: input, shape index: {}]   ;;  %s1864_s2 = inlined_call_operand.vmem [shape: f32[8,4], index: 2, kind: input, shape index: {}]   ;;  %s1865_s3 = inlined_call_operand.vmem [shape: f32[8,256], index: 3, kind: output, shape index: {}]  }
   0x1   :  { %1105 = vset.pattern.permute.xlu1 %v1188_v0  ;;  %v1292_v1 = vld [vmem:[%s1862_s1] sm:$0xff]  ;;  %1107 = vset.pattern.permute.xlu2 %v1189_v3  ;;  %v1307_v5 = vld [vmem:[%s1863_s0 + $0x8] sm:$0xff]  ;;  %v1193_v7 = vmov 3   ;;  %v1195_v8 = vmov 6   ;;  %v1196_v9 = vmov 4   ;;  %v1197_v10 = vmov 7  }
   0x2   :  { %v1297_v2 = vld [vmem:[%s1863_s0] sm:$0xff]  ;;  %86 = vperm.xlu1 %1105, %v1292_v1   ;;  %106 = vperm.xlu2 %1107, %v1292_v1   ;;  %v1198_v11 = vmov 8   ;;  %s1199_s20 = smov 15   ;;  %v1200_v12 = vmov 9   ;;  %v1201_v13 = vmov 10   ;;  %s1202_s21 = smov 1   ;;  %v16_v32 = vlaneseq }
   0x3   :  { %74 = vrot.lane.b32.xlu0 %v1297_v2, %s1190_s16  ;;  %v1203_v14 = vmov 14   ;;  %v1204_v15 = vmov 11   ;;  %v1205_v16 = vmov 13   ;;  %v1206_v17 = vmov 19   ;;  %s1214_s22 = smov 127   ;;  %s1219_s23 = smov 113  }
   0x4   :  { %1110 = vset.pattern.permute.xlu0 %v1191_v4  ;;  %v1207_v18 = vmov 12   ;;  %v1208_v19 = vmov 22   ;;  %v1209_v20 = vmov 15   ;;  %v1210_v21 = vmov 16   ;;  %s1221_s24 = smov 111   ;;  %s1225_s25 = smov 112  }
   0x5   :  { %v1211_v22 = vmov 17   ;;  %v1212_v23 = vmov 18   ;;  %v1213_v24 = vmov 25   ;;  %v1215_v25 = vmov 20  }
   0x6   :  { %v1216_v26 = vmov 21   ;;  %v1217_v28 = vmov 28   ;;  %v1218_v30 = vmov 23   ;;  %v1220_v31 = vmov 24  }
   0x7   :  { %v1360_v33 = vand.u32 127, %v16_v32  ;;  %v1222_v35 = vmov 26   ;;  %v1223_v43 = vmov 27   ;;  %v1224_v46 = vmov 34  }
   0x8   :  { %v1226_v59 = vmov 29  }
   0x9   :  { %v1368_v36 = vadd.s32 128, %v1360_v33  ;;  %v23_v39 = vand.u32 15, %v1360_v33  ;;  %vm58_vm0 = vcmp.ge.s32.totalorder %v1360_v33, 16  ;;  %vm78_vm2 = vcmp.lt.s32.totalorder %v1360_v33, 17 }
   0xa   :  { %1106 = vset.pattern.permute.xlu1 %v1192_v6  ;;  %1108 = vset.pattern.permute.xlu2 %v1193_v7  ;;  %vm127_vm5 = vcmp.lt.s32.totalorder %v1360_v33, 16  ;;  %vm174_vm7 = vcmp.lt.s32.totalorder %v1360_v33, 15  ;;  %vm1871_vm10 = vcmp.lt.s32.totalorder %v1360_v33, 1  ;;  %vm1870_vm11 = vcmp.lt.s32.totalorder %v1360_v33, 127 }
   0xb   :  { %76 = vrot.lane.b32.xlu0 %v1307_v5, %s1190_s16  ;;  %96 = vperm.xlu1 %1106, %v1292_v1   ;;  %v30_v40 = vand.u32 15, %v1368_v36  ;;  %vm1376_vm1 = vcmp.ge.s32.totalorder %v23_v39, 1  ;;  %vm1425_vm6 = vcmp.lt.s32.totalorder %v23_v39, 15  ;;  %vm1869_vm12 = vcmp.lt.s32.totalorder %v1368_v36, 240 }
   0xc   :  { %116 = vperm.xlu2 %1108, %v1292_v1   ;;  %vm1392_vm4 = vmand %vm58_vm0, %vm1376_vm1  ;;  %vm1866_vm13 = vcmp.lt.s32.totalorder %v1360_v33, 113  ;;  %vm1867_vm15 = vcmp.lt.s32.totalorder %v1360_v33, 112 }
   0xd   :  { %vm1384_vm3 = vcmp.ge.s32.totalorder %v30_v40, 1  ;;  %vm1434_vm8 = vcmp.lt.s32.totalorder %v30_v40, 15  ;;  %vm1442_vm9 = vmand %vm58_vm0, %vm1425_vm6 }
   0xe   :  { %vm1499_vm14 = vmand %vm1869_vm12, %vm1384_vm3 }
  0x13   :  { %123 = vrot.lane.b32.xlu0 %v1297_v2, %s1194_s19  ;;  %125 = vrot.lane.b32.xlu1 %v1307_v5, %s1194_s19 }
  0x14   :  { %1111 = vset.pattern.permute.xlu1 %v1195_v8  ;;  %1109 = vset.pattern.permute.xlu2 %v1196_v9 }
  0x15   :  { %133 = vperm.xlu2 %1109, %v1292_v1  }
  0x1b   :  { %143 = vperm.xlu0 %1110, %v1292_v1   ;;  %153 = vperm.xlu1 %1111, %v1292_v1  }
  0x1d   :  { %1112 = vset.pattern.permute.xlu2 %v1197_v10  ;;  %v1227_v10 = vmov 30  }
  0x1e   :  { %163 = vperm.xlu2 %1112, %v1292_v1  }
  0x23   :  { %1113 = vset.pattern.permute.xlu0 %v1198_v11  ;;  %170 = vrot.lane.b32.xlu1 %v1297_v2, %s1199_s20 }
  0x24   :  { %180 = vperm.xlu0 %1113, %v1292_v1   ;;  %1114 = vset.pattern.permute.xlu1 %v1200_v12 }
  0x26   :  { %172 = vrot.lane.b32.xlu2 %v1307_v5, %s1199_s20 }
  0x27   :  { %1115 = vset.pattern.permute.xlu2 %v1201_v13 }
  0x2b   :  { %190 = vperm.xlu1 %1114, %v1292_v1  }
  0x2c   :  { %219 = vrot.lane.b32.xlu0 %v1307_v5, %s1202_s21 }
  0x2d   :  { %1119 = vset.pattern.permute.xlu0 %v1203_v14 }
  0x2e   :  { %200 = vperm.xlu2 %1115, %v1292_v1  }
  0x33   :  { %1116 = vset.pattern.permute.xlu1 %v1204_v15 }
  0x34   :  { %247 = vperm.xlu0 %1119, %v1292_v1   ;;  %210 = vperm.xlu1 %1116, %v1292_v1  }
  0x36   :  { %217 = vrot.lane.b32.xlu2 %v1297_v2, %s1202_s21 }
  0x37   :  { %1118 = vset.pattern.permute.xlu2 %v1205_v16 }
  0x3c   :  { %1124 = vset.pattern.permute.xlu0 %v1206_v17  ;;  %1117 = vset.pattern.permute.xlu1 %v1207_v18 }
  0x3d   :  { %295 = vperm.xlu0 %1124, %v1292_v1   ;;  %227 = vperm.xlu1 %1117, %v1292_v1  }
  0x3e   :  { %237 = vperm.xlu2 %1118, %v1292_v1  }
  0x45   :  { %1127 = vset.pattern.permute.xlu0 %v1208_v19  ;;  %1120 = vset.pattern.permute.xlu1 %v1209_v20 }
  0x46   :  { %332 = vperm.xlu0 %1127, %v1292_v1   ;;  %257 = vperm.xlu1 %1120, %v1292_v1  }
  0x47   :  { %1121 = vset.pattern.permute.xlu2 %v1210_v21 }
  0x48   :  { %265 = vperm.xlu2 %1121, %v1292_v1  }
  0x4e   :  { %1122 = vset.pattern.permute.xlu1 %v1211_v22  ;;  %1130 = vset.pattern.permute.xlu0 %v1213_v24 }
  0x4f   :  { %275 = vperm.xlu1 %1122, %v1292_v1   ;;  %369 = vperm.xlu0 %1130, %v1292_v1  }
  0x50   :  { %1123 = vset.pattern.permute.xlu2 %v1212_v23 }
  0x51   :  { %285 = vperm.xlu2 %1123, %v1292_v1  }
  0x57   :  { %302 = vrot.lane.b32.xlu1 %v1297_v2, %s1214_s22  ;;  %1133 = vset.pattern.permute.xlu0 %v1217_v28 }
  0x58   :  { %1125 = vset.pattern.permute.xlu1 %v1215_v25  ;;  %406 = vperm.xlu0 %1133, %v1292_v1  }
  0x59   :  { %304 = vrot.lane.b32.xlu2 %v1307_v5, %s1214_s22 }
  0x5a   :  { %1126 = vset.pattern.permute.xlu2 %v1216_v26 }
  0x5c   :  { %v1349_v27 = vpop.permute.xlu2 %106 }
  0x5f   :  { %312 = vperm.xlu1 %1125, %v1292_v1  }
  0x60   :  { %445 = vrot.lane.b32.xlu0 %v1307_v5, %s1221_s24 }
  0x61   :  { %322 = vperm.xlu2 %1126, %v1292_v1   ;;  %1139 = vset.pattern.permute.xlu0 %v1224_v46 }
  0x66   :  { %v117_v29 = vpop.permute.xlu2 %116 }
  0x67   :  { %1128 = vset.pattern.permute.xlu1 %v1218_v30 }
  0x68   :  { %342 = vperm.xlu1 %1128, %v1292_v1   ;;  %473 = vperm.xlu0 %1139, %v1292_v1  }
  0x69   :  { %349 = vrot.lane.b32.xlu2 %v1297_v2, %s1219_s23 }
  0x6a   :  { %1129 = vset.pattern.permute.xlu2 %v1220_v31 }
  0x6f   :  { %v1362_v34 = vpop.permute.xlu2 %133 }
  0x70   :  { %351 = vrot.lane.b32.xlu1 %v1307_v5, %s1219_s23 }
  0x71   :  { %359 = vperm.xlu2 %1129, %v1292_v1   ;;  %1131 = vset.pattern.permute.xlu1 %v1222_v35 }
  0x74   :  { %v87_v37 = vpop.permute.xlu1 %86 }
  0x75   :  { %v75_v38 = vpop.permute.xlu0 %74 }
  0x78   :  { %379 = vperm.xlu1 %1131, %v1292_v1   ;;  %v164_v42 = vpop.permute.xlu2 %163 }
  0x79   :  { %1132 = vset.pattern.permute.xlu2 %v1223_v43 }
  0x7a   :  { %389 = vperm.xlu2 %1132, %v1292_v1  }
  0x7d   :  { %v77_v47 = vpop.permute.xlu0 %76  ;;  %v97_v50 = vpop.permute.xlu1 %96 }
  0x7e   :  { %v79_v48 = vsel %vm78_vm2, %v75_v38, %v77_v47  ;;  %v80_v49 = vsel %vm78_vm2, %v77_v47, %v75_v38 }
  0x7f   :  { %v81_v51 = vsel %vm1392_vm4, %v80_v49, 0.0  ;;  %v82_v52 = vsel %vm1384_vm3, %v79_v48, 0.0 }
  0x80   :  { %v113_v53 = vrot.slane %v81_v51, 2  ;;  %v114_v54 = vrot.slane %v82_v52, 2  ;;  %v103_v55 = vrot.slane %v81_v51, 4  ;;  %v104_v56 = vrot.slane %v82_v52, 4  ;;  %396 = vrot.lane.b32.xlu1 %v1297_v2, %s1225_s25  ;;  %v173_v4 = vpop.permute.xlu2 %172 }
  0x81   :  { %v93_v57 = vrot.slane %v81_v51, 6  ;;  %v94_v58 = vrot.slane %v82_v52, 6  ;;  %1134 = vset.pattern.permute.xlu1 %v1226_v59  ;;  %v89_v60 = vmul.f32 %v87_v37, %v81_v51  ;;  %v90_v61 = vmul.f32 %v87_v37, %v82_v52 }
  0x82   :  { %398 = vrot.lane.b32.xlu2 %v1307_v5, %s1225_s25  ;;  %v119_v8 = vmul.f32 %v117_v29, %v113_v53  ;;  %v120_v9 = vmul.f32 %v117_v29, %v114_v54  ;;  %v109_v13 = vmul.f32 %v1349_v27, %v103_v55  ;;  %v110_v14 = vmul.f32 %v1349_v27, %v104_v56 }
  0x83   :  { %v99_v62 = vmul.f32 %v97_v50, %v93_v57  ;;  %v100_v63 = vmul.f32 %v97_v50, %v94_v58  ;;  %1135 = vset.pattern.permute.xlu2 %v1227_v10  ;;  %v1228_v54 = vmov 31   ;;  %v1229_v59 = vmov 33  }
  0x85   :  { %v101_v11 = vadd.f32 %v99_v62, %v89_v60  ;;  %v102_v12 = vadd.f32 %v100_v63, %v90_v61  ;;  %v124_v15 = vpop.permute.xlu0 %123  ;;  %v126_v16 = vpop.permute.xlu1 %125 }
  0x86   :  { %v128_v19 = vsel %vm127_vm5, %v124_v15, %v126_v16  ;;  %v129_v20 = vsel %vm127_vm5, %v126_v16, %v124_v15 }
  0x87   :  { %v111_v17 = vadd.f32 %v109_v13, %v101_v11  ;;  %v112_v18 = vadd.f32 %v110_v14, %v102_v12  ;;  %v130_v21 = vsel %vm58_vm0, %v129_v20, 0.0  ;;  %v137_v22 = vmul.f32 %v1362_v34, %v128_v19 }
  0x88   :  { %v161_v23 = vrot.slane %v128_v19, 2  ;;  %v136_v24 = vmul.f32 %v1362_v34, %v130_v21  ;;  %v160_v25 = vrot.slane %v130_v21, 2  ;;  %416 = vperm.xlu1 %1134, %v1292_v1   ;;  %v140_v35 = vrot.slane %v130_v21, 6  ;;  %v201_v47 = vpop.permute.xlu2 %200 }
  0x89   :  { %v121_v26 = vadd.f32 %v119_v8, %v111_v17  ;;  %v122_v27 = vadd.f32 %v120_v9, %v112_v18  ;;  %v141_v37 = vrot.slane %v128_v19, 6  ;;  %v150_v43 = vrot.slane %v130_v21, 4 }
  0x8a   :  { %v167_v28 = vmul.f32 %v164_v42, %v161_v23  ;;  %v166_v29 = vmul.f32 %v164_v42, %v160_v25  ;;  %426 = vperm.xlu2 %1135, %v1292_v1   ;;  %v151_v46 = vrot.slane %v128_v19, 4  ;;  %v1230_v13 = vmov 32  }
  0x8b   :  { %v138_v30 = vadd.f32 %v136_v24, %v121_v26  ;;  %v139_v31 = vadd.f32 %v137_v22, %v122_v27  ;;  %v1231_v27 = vmov 35  }
  0x8d   :  { %v144_v38 = vpop.permute.xlu0 %143  ;;  %v154_v34 = vpop.permute.xlu1 %153 }
  0x8e   :  { %v146_v48 = vmul.f32 %v144_v38, %v140_v35  ;;  %v147_v49 = vmul.f32 %v144_v38, %v141_v37  ;;  %v156_v50 = vmul.f32 %v154_v34, %v150_v43  ;;  %v157_v51 = vmul.f32 %v154_v34, %v151_v46 }
  0x90   :  { %v148_v52 = vadd.f32 %v146_v48, %v138_v30  ;;  %v149_v53 = vadd.f32 %v147_v49, %v139_v31  ;;  %1136 = vset.pattern.permute.xlu1 %v1228_v54  ;;  %v218_v61 = vpop.permute.xlu2 %217 }
  0x91   :  { %436 = vperm.xlu1 %1136, %v1292_v1  }
  0x92   :  { %v158_v42 = vadd.f32 %v156_v50, %v148_v52  ;;  %v159_v55 = vadd.f32 %v157_v51, %v149_v53  ;;  %443 = vrot.lane.b32.xlu2 %v1297_v2, %s1221_s24 }
  0x93   :  { %1138 = vset.pattern.permute.xlu2 %v1229_v59 }
  0x94   :  { %v168_v57 = vadd.f32 %v166_v29, %v158_v42  ;;  %v169_v58 = vadd.f32 %v167_v28, %v159_v55 }
  0x95   :  { %v171_v62 = vpop.permute.xlu1 %170 }
  0x96   :  { %v181_v63 = vpop.permute.xlu0 %180  ;;  %v175_v8 = vsel %vm174_vm7, %v171_v62, %v173_v4  ;;  %v176_v40 = vsel %vm174_vm7, %v173_v4, %v171_v62 }
  0x97   :  { %v177_v9 = vsel %vm1442_vm9, %v176_v40, 0.0  ;;  %v178_v10 = vsel %vm1434_vm8, %v175_v8, 0.0 }
  0x98   :  { %v183_v11 = vmul.f32 %v181_v63, %v177_v9  ;;  %v184_v12 = vmul.f32 %v181_v63, %v178_v10  ;;  %v197_v16 = vrot.slane %v177_v9, 4  ;;  %v198_v17 = vrot.slane %v178_v10, 4  ;;  %v238_v22 = vpop.permute.xlu2 %237 }
  0x99   :  { %1137 = vset.pattern.permute.xlu1 %v1230_v13  ;;  %v187_v18 = vrot.slane %v177_v9, 6  ;;  %v188_v4 = vrot.slane %v178_v10, 6  ;;  %v207_v30 = vrot.slane %v177_v9, 2  ;;  %v208_v31 = vrot.slane %v178_v10, 2 }
  0x9a   :  { %v185_v14 = vadd.f32 %v183_v11, %v168_v57  ;;  %v186_v15 = vadd.f32 %v184_v12, %v169_v58  ;;  %453 = vperm.xlu1 %1137, %v1292_v1   ;;  %463 = vperm.xlu2 %1138, %v1292_v1   ;;  %v203_v23 = vmul.f32 %v201_v47, %v197_v16 }
  0x9b   :  { %v204_v24 = vmul.f32 %v201_v47, %v198_v17 }
  0x9d   :  { %v191_v19 = vpop.permute.xlu1 %190 }
  0x9e   :  { %v193_v20 = vmul.f32 %v191_v19, %v187_v18  ;;  %v194_v21 = vmul.f32 %v191_v19, %v188_v4  ;;  %v220_v52 = vpop.permute.xlu0 %219 }
  0x9f   :  { %v222_v54 = vsel %vm1871_vm10, %v218_v61, %v220_v52  ;;  %v223_v42 = vsel %vm1871_vm10, %v220_v52, %v218_v61 }
  0xa0   :  { %v195_v25 = vadd.f32 %v193_v20, %v185_v14  ;;  %v196_v26 = vadd.f32 %v194_v21, %v186_v15  ;;  %v224_v57 = vsel %vm1376_vm1, %v223_v42, 0.0  ;;  %v225_v58 = vsel %vm1384_vm3, %v222_v54, 0.0 }
  0xa1   :  { %v234_v59 = vrot.slane %v224_v57, 6  ;;  %v235_v62 = vrot.slane %v225_v58, 6  ;;  %v244_v40 = vrot.slane %v224_v57, 4  ;;  %v245_v9 = vrot.slane %v225_v58, 4 }
  0xa2   :  { %1140 = vset.pattern.permute.xlu1 %v1231_v27  ;;  %v205_v28 = vadd.f32 %v203_v23, %v195_v25  ;;  %v206_v29 = vadd.f32 %v204_v24, %v196_v26  ;;  %v266_v48 = vpop.permute.xlu2 %265  ;;  %v254_v16 = vrot.slane %v224_v57, 2  ;;  %v255_v17 = vrot.slane %v225_v58, 2 }
  0xa3   :  { %483 = vperm.xlu1 %1140, %v1292_v1   ;;  %v240_v12 = vmul.f32 %v238_v22, %v234_v59  ;;  %v241_v13 = vmul.f32 %v238_v22, %v235_v62  ;;  %v273_v26 = vrot.slane %v1307_v5, 6  ;;  %v272_v27 = vrot.slane %v1297_v2, 6 }
  0xa4   :  { %v268_v22 = vmul.f32 %v266_v48, %v1297_v2  ;;  %v293_v54 = vrot.slane %v1307_v5, 2  ;;  %v292_v42 = vrot.slane %v1297_v2, 2 }
  0xa6   :  { %v211_v35 = vpop.permute.xlu1 %210  ;;  %v248_v15 = vpop.permute.xlu0 %247 }
  0xa7   :  { %v213_v37 = vmul.f32 %v211_v35, %v207_v30  ;;  %v214_v38 = vmul.f32 %v211_v35, %v208_v31  ;;  %v250_v19 = vmul.f32 %v248_v15, %v244_v40  ;;  %v251_v20 = vmul.f32 %v248_v15, %v245_v9 }
  0xa8   :  { %v269_v30 = vmul.f32 %v266_v48, %v1307_v5 }
  0xa9   :  { %v215_v43 = vadd.f32 %v213_v37, %v205_v28  ;;  %v216_v46 = vadd.f32 %v214_v38, %v206_v29  ;;  %v283_v37 = vrot.slane %v1307_v5, 4  ;;  %v282_v38 = vrot.slane %v1297_v2, 4 }
  0xab   :  { %v286_v34 = vpop.permute.xlu2 %285 }
  0xaf   :  { %v228_v49 = vpop.permute.xlu1 %227 }
  0xb0   :  { %v230_v63 = vmul.f32 %v228_v49, %v224_v57  ;;  %v231_v8 = vmul.f32 %v228_v49, %v225_v58  ;;  %v296_v49 = vpop.permute.xlu0 %295  ;;  %v288_v57 = vmul.f32 %v286_v34, %v282_v38  ;;  %v289_v58 = vmul.f32 %v286_v34, %v283_v37 }
  0xb1   :  { %v298_v5 = vmul.f32 %v296_v49, %v292_v42 }
  0xb2   :  { %v232_v14 = vadd.f32 %v230_v63, %v215_v43  ;;  %v233_v61 = vadd.f32 %v231_v8, %v216_v46 }
  0xb3   :  { %v305_v47 = vpop.permute.xlu2 %304 }
  0xb4   :  { %v242_v18 = vadd.f32 %v240_v12, %v232_v14  ;;  %v243_v4 = vadd.f32 %v241_v13, %v233_v61  ;;  %v299_v12 = vmul.f32 %v296_v49, %v293_v54 }
  0xb6   :  { %v252_v24 = vadd.f32 %v250_v19, %v242_v18  ;;  %v253_v25 = vadd.f32 %v251_v20, %v243_v4 }
  0xb8   :  { %v258_v50 = vpop.permute.xlu1 %257  ;;  %v333_v61 = vpop.permute.xlu0 %332 }
  0xb9   :  { %v260_v21 = vmul.f32 %v258_v50, %v254_v16  ;;  %v261_v23 = vmul.f32 %v258_v50, %v255_v17 }
  0xbb   :  { %v1458_v53 = vpop.permute.xlu2 %322  ;;  %v262_v31 = vadd.f32 %v260_v21, %v252_v24  ;;  %v263_v35 = vadd.f32 %v261_v23, %v253_v25 }
  0xbd   :  { %v270_v50 = vadd.f32 %v268_v22, %v262_v31  ;;  %v271_v52 = vadd.f32 %v269_v30, %v263_v35 }
  0xc1   :  { %v276_v51 = vpop.permute.xlu1 %275  ;;  %v370_v31 = vpop.permute.xlu0 %369 }
  0xc2   :  { %v278_v43 = vmul.f32 %v276_v51, %v272_v27  ;;  %v279_v46 = vmul.f32 %v276_v51, %v273_v26 }
  0xc3   :  { %v1468_v11 = vpop.permute.xlu2 %349 }
  0xc4   :  { %v280_v48 = vadd.f32 %v278_v43, %v270_v50  ;;  %v281_v59 = vadd.f32 %v279_v46, %v271_v52 }
  0xc6   :  { %v291_v40 = vadd.f32 %v289_v58, %v281_v59  ;;  %v290_v9 = vadd.f32 %v288_v57, %v280_v48 }
  0xc8   :  { %v300_v15 = vadd.f32 %v298_v5, %v290_v9  ;;  %v301_v16 = vadd.f32 %v299_v12, %v291_v40 }
  0xc9   :  { %v303_v55 = vpop.permute.xlu1 %302 }
  0xca   :  { %v307_v63 = vsel %vm1870_vm11, %v303_v55, %v305_v47  ;;  %v308_v51 = vsel %vm1870_vm11, %v305_v47, %v303_v55  ;;  %v407_v12 = vpop.permute.xlu0 %406 }
  0xcb   :  { %v1472_v29 = vpop.permute.xlu2 %359  ;;  %v309_v2 = vsel %vm1425_vm6, %v307_v63, 0.0  ;;  %v310_v34 = vsel %vm1434_vm8, %v308_v51, 0.0 }
  0xcc   :  { %v319_v17 = vrot.slane %v309_v2, 6  ;;  %v320_v18 = vrot.slane %v310_v34, 6  ;;  %v329_v21 = vrot.slane %v309_v2, 4  ;;  %v330_v23 = vrot.slane %v310_v34, 4 }
  0xcd   :  { %v339_v22 = vrot.slane %v309_v2, 2  ;;  %v340_v30 = vrot.slane %v310_v34, 2 }
  0xce   :  { %v325_v19 = vmul.f32 %v1458_v53, %v319_v17  ;;  %v326_v20 = vmul.f32 %v1458_v53, %v320_v18  ;;  %v335_v35 = vmul.f32 %v333_v61, %v329_v21  ;;  %v336_v37 = vmul.f32 %v333_v61, %v330_v23 }
  0xd1   :  { %v313_v10 = vpop.permute.xlu1 %312 }
  0xd2   :  { %v315_v13 = vmul.f32 %v313_v10, %v309_v2  ;;  %v316_v14 = vmul.f32 %v313_v10, %v310_v34 }
  0xd4   :  { %v1485_v8 = vpop.permute.xlu2 %389  ;;  %v317_v55 = vadd.f32 %v315_v13, %v300_v15  ;;  %v318_v4 = vadd.f32 %v316_v14, %v301_v16 }
  0xd6   :  { %v327_v53 = vadd.f32 %v325_v19, %v317_v55  ;;  %v328_v27 = vadd.f32 %v326_v20, %v318_v4 }
  0xd8   :  { %v337_v52 = vadd.f32 %v335_v35, %v327_v53  ;;  %v338_v54 = vadd.f32 %v336_v37, %v328_v27  ;;  %v446_v53 = vpop.permute.xlu0 %445 }
  0xda   :  { %v343_v28 = vpop.permute.xlu1 %342 }
  0xdb   :  { %v345_v49 = vmul.f32 %v343_v28, %v339_v22  ;;  %v346_v50 = vmul.f32 %v343_v28, %v340_v30 }
  0xdc   :  { %v399_v26 = vpop.permute.xlu2 %398 }
  0xdd   :  { %v347_v48 = vadd.f32 %v345_v49, %v337_v52  ;;  %v348_v59 = vadd.f32 %v346_v50, %v338_v54 }
  0xe2   :  { %v352_v62 = vpop.permute.xlu1 %351 }
  0xe3   :  { %v354_v24 = vsel %vm1866_vm13, %v1468_v11, %v352_v62  ;;  %v355_v25 = vsel %vm1866_vm13, %v352_v62, %v1468_v11  ;;  %vm1868_vm13 = vcmp.lt.s32.totalorder %v1360_v33, 111 }
  0xe4   :  { %v356_v38 = vsel %vm1376_vm1, %v354_v24, 0.0  ;;  %v357_v43 = vsel %vm1499_vm14, %v355_v25, 0.0  ;;  %v427_v28 = vpop.permute.xlu2 %426 }
  0xe5   :  { %v362_v11 = vmul.f32 %v1472_v29, %v356_v38  ;;  %v363_v42 = vmul.f32 %v1472_v29, %v357_v43  ;;  %v366_v57 = vrot.slane %v356_v38, 6  ;;  %v367_v58 = vrot.slane %v357_v43, 6 }
  0xe6   :  { %v376_v62 = vrot.slane %v356_v38, 4  ;;  %v377_v63 = vrot.slane %v357_v43, 4  ;;  %v386_v14 = vrot.slane %v356_v38, 2  ;;  %v387_v61 = vrot.slane %v357_v43, 2 }
  0xe7   :  { %v365_v51 = vadd.f32 %v363_v42, %v348_v59  ;;  %v364_v40 = vadd.f32 %v362_v11, %v347_v48  ;;  %v372_v9 = vmul.f32 %v370_v31, %v366_v57  ;;  %v373_v5 = vmul.f32 %v370_v31, %v367_v58 }
  0xe8   :  { %v392_v19 = vmul.f32 %v1485_v8, %v386_v14 }
  0xe9   :  { %v374_v15 = vadd.f32 %v372_v9, %v364_v40  ;;  %v375_v16 = vadd.f32 %v373_v5, %v365_v51 }
  0xea   :  { %v380_v47 = vpop.permute.xlu1 %379 }
  0xeb   :  { %v382_v34 = vmul.f32 %v380_v47, %v376_v62  ;;  %v383_v13 = vmul.f32 %v380_v47, %v377_v63  ;;  %v393_v47 = vmul.f32 %v1485_v8, %v387_v61 }
  0xec   :  { %v444_v25 = vpop.permute.xlu2 %443 }
  0xed   :  { %v384_v55 = vadd.f32 %v382_v34, %v374_v15  ;;  %v385_v4 = vadd.f32 %v383_v13, %v375_v16  ;;  %v449_v27 = vsel %vm1868_vm13, %v446_v53, %v444_v25 }
  0xef   :  { %v395_v22 = vadd.f32 %v393_v47, %v385_v4  ;;  %v394_v30 = vadd.f32 %v392_v19, %v384_v55  ;;  %v474_v55 = vpop.permute.xlu0 %473 }
  0xf2   :  { %v397_v46 = vpop.permute.xlu1 %396 }
  0xf3   :  { %v402_v29 = vsel %vm1867_vm15, %v399_v26, %v397_v46  ;;  %v401_v17 = vsel %vm1867_vm15, %v397_v46, %v399_v26  ;;  %v448_v26 = vsel %vm1868_vm13, %v444_v25, %v446_v53  ;;  %vm1533_vm15 = vmand %vm1869_vm12, %vm1434_vm8 }
  0xf4   :  { %v404_v18 = vsel %vm1869_vm12, %v402_v29, 0.0  ;;  %v409_v20 = vmul.f32 %v407_v12, %v401_v17  ;;  %v413_v23 = vrot.slane %v401_v17, 6  ;;  %v423_v46 = vrot.slane %v401_v17, 4  ;;  %v464_v5 = vpop.permute.xlu2 %463 }
  0xf5   :  { %v410_v21 = vmul.f32 %v407_v12, %v404_v18  ;;  %v414_v24 = vrot.slane %v404_v18, 6  ;;  %v424_v49 = vrot.slane %v404_v18, 4  ;;  %v450_v50 = vsel %vm1425_vm6, %v448_v26, 0.0 }
  0xf6   :  { %v411_v38 = vadd.f32 %v409_v20, %v394_v30  ;;  %v451_v52 = vsel %vm1533_vm15, %v449_v27, 0.0  ;;  %v433_v42 = vrot.slane %v401_v17, 2  ;;  %v434_v57 = vrot.slane %v404_v18, 2 }
  0xf7   :  { %v412_v43 = vadd.f32 %v410_v21, %v395_v22  ;;  %v429_v58 = vmul.f32 %v427_v28, %v423_v46  ;;  %v430_v48 = vmul.f32 %v427_v28, %v424_v49  ;;  %v460_v63 = vrot.slane %v450_v50, 6 }
  0xf8   :  { %v461_v51 = vrot.slane %v451_v52, 6  ;;  %v470_v17 = vrot.slane %v450_v50, 4  ;;  %v471_v18 = vrot.slane %v451_v52, 4  ;;  %v44_v28 = vshrl.u32 %v16_v32, 7 }
  0xf9   :  { %v466_v14 = vmul.f32 %v464_v5, %v460_v63  ;;  %v480_v21 = vrot.slane %v450_v50, 2  ;;  %v1232_v63 = vmov 36  }
  0xfa   :  { %v417_v2 = vpop.permute.xlu1 %416  ;;  %v467_v61 = vmul.f32 %v464_v5, %v461_v51  ;;  %v476_v47 = vmul.f32 %v474_v55, %v470_v17  ;;  %v477_v20 = vmul.f32 %v474_v55, %v471_v18  ;;  %v49_v25 = vand.u32 1, %v44_v28  ;;  %1141 = vset.pattern.permute.xlu0 %v1232_v63  ;;  %v1573_v28 = vld [vmem:[%s1864_s2] sm:$0xff] }
  0xfb   :  { %v419_v31 = vmul.f32 %v417_v2, %v413_v23  ;;  %v420_v35 = vmul.f32 %v417_v2, %v414_v24  ;;  %v481_v23 = vrot.slane %v451_v52, 2  ;;  %559 = vperm.xlu0 %1141, %v1292_v1  }
  0xfc   :  { %vm1546_vm13 = vcmp.eq.s32.totalorder %v49_v25, 0  ;;  %v1240_v25 = vmov 49  }
  0xfd   :  { %v421_v54 = vadd.f32 %v419_v31, %v411_v38  ;;  %v422_v11 = vadd.f32 %v420_v35, %v412_v43 }
  0xff   :  { %v431_v40 = vadd.f32 %v429_v58, %v421_v54  ;;  %v432_v9 = vadd.f32 %v430_v48, %v422_v11 }
 0x103   :  { %v437_v37 = vpop.permute.xlu1 %436  ;;  %1143 = vset.pattern.permute.xlu0 %v1188_v0  ;;  %v1236_v0 = vmov 39  }
 0x104   :  { %v439_v59 = vmul.f32 %v437_v37, %v433_v42  ;;  %v440_v62 = vmul.f32 %v437_v37, %v434_v57 }
 0x106   :  { %v441_v2 = vadd.f32 %v439_v59, %v431_v40  ;;  %v442_v34 = vadd.f32 %v440_v62, %v432_v9 }
 0x10c   :  { %v454_v12 = vpop.permute.xlu1 %453 }
 0x10d   :  { %v456_v13 = vmul.f32 %v454_v12, %v450_v50  ;;  %v457_v29 = vmul.f32 %v454_v12, %v451_v52 }
 0x10f   :  { %v458_v15 = vadd.f32 %v456_v13, %v441_v2  ;;  %v459_v16 = vadd.f32 %v457_v29, %v442_v34  ;;  %v1233_v13 = vmov 40   ;;  %v1234_v29 = vmov 37  }
 0x110   :  { %1146 = vset.pattern.permute.xlu1 %v1233_v13  ;;  %1142 = vset.pattern.permute.xlu2 %v1234_v29 }
 0x111   :  { %v468_v4 = vadd.f32 %v466_v14, %v458_v15  ;;  %v469_v19 = vadd.f32 %v467_v61, %v459_v16  ;;  %v1235_v15 = vmov 43  }
 0x113   :  { %v478_v53 = vadd.f32 %v476_v47, %v468_v4  ;;  %v479_v26 = vadd.f32 %v477_v20, %v469_v19  ;;  %v1237_v19 = vmov 46  }
 0x115   :  { %v484_v24 = vpop.permute.xlu1 %483 }
 0x116   :  { %v486_v27 = vmul.f32 %v484_v24, %v480_v21  ;;  %v487_v22 = vmul.f32 %v484_v24, %v481_v23  ;;  %v1238_v23 = vmov 38   ;;  %v1239_v24 = vmov 42  }
 0x118   :  { %v1542_v30 = vadd.f32 %v486_v27, %v478_v53  ;;  %v1544_v31 = vadd.f32 %v487_v22, %v479_v26  ;;  %v1241_v53 = vmov 41   ;;  %v1242_v26 = vmov 45   ;;  %v1586_v22 = vld [vmem:[%s1862_s1] sm:$0xff] }
 0x119   :  { %v1243_v27 = vmov 52  }
 0x11a   :  { %v490_v32 = vrot.slane %v1542_v30, 1  ;;  %v491_v37 = vrot.slane %v1544_v31, 1  ;;  %v492_v38 = vrot.slane %v1542_v30, 7  ;;  %v493_v43 = vrot.slane %v1544_v31, 7 }
 0x11b   :  { %v501_v50 = vmul.f32 %v1542_v30, %v1542_v30  ;;  %v502_v52 = vmul.f32 %v1544_v31, %v1544_v31 }
 0x11c   :  { %v494_v46 = vsel %vm1546_vm13, %v490_v32, %v492_v38  ;;  %v495_v49 = vsel %vm1546_vm13, %v491_v37, %v493_v43  ;;  %v1244_v32 = vmov 47   ;;  %v1245_v37 = vmov 54  }
 0x11d   :  { %v496_v54 = vadd.f32 %v494_v46, %v1542_v30  ;;  %v497_v11 = vadd.f32 %v495_v49, %v1544_v31  ;;  %v503_v42 = vmul.f32 %v494_v46, %v494_v46  ;;  %v504_v57 = vmul.f32 %v495_v49, %v495_v49 }
 0x11e   :  { %v1247_v43 = vmov 51  }
 0x11f   :  { %v498_v58 = vadd.f32 %v497_v11, %v496_v54  ;;  %v505_v48 = vadd.f32 %v503_v42, %v501_v50  ;;  %v506_v59 = vadd.f32 %v504_v57, %v502_v52  ;;  %v1249_v52 = vmov 44  }
 0x120   :  { %v1250_v54 = vmov 50   ;;  %v1251_v11 = vmov 55   ;;  %v1252_v42 = vmov 57   ;;  %v1253_v57 = vmov 56  }
 0x121   :  { %499 = vadd.xlane.f32.xlu2 %v498_v58  ;;  %v507_v62 = vadd.f32 %v506_v59, %v505_v48  ;;  %v1254_v58 = vmov 60   ;;  %v1255_v48 = vmov 59   ;;  %v1256_v59 = vmov 58  }
 0x123   :  { %508 = vadd.xlane.f32.xlu1 %v507_v62  ;;  %v1257_v62 = vmov 61  }
 0x139   :  { %569 = vperm.xlu2 %1142, %v1292_v1  }
 0x13c   :  { %605 = vperm.xlu1 %1146, %v1292_v1  }
 0x141   :  { %1145 = vset.pattern.permute.xlu2 %v1236_v0 }
 0x142   :  { %589 = vperm.xlu2 %1145, %v1292_v1  }
 0x144   :  { %1149 = vset.pattern.permute.xlu1 %v1235_v15 }
 0x145   :  { %635 = vperm.xlu1 %1149, %v1292_v1  }
 0x14a   :  { %1148 = vset.pattern.permute.xlu2 %v1239_v24  ;;  %v1266_v24 = vmov 68  }
 0x14b   :  { %625 = vperm.xlu2 %1148, %v1292_v1  }
 0x14d   :  { %1153 = vset.pattern.permute.xlu1 %v1237_v19 }
 0x14e   :  { %671 = vperm.xlu1 %1153, %v1292_v1  }
 0x153   :  { %1152 = vset.pattern.permute.xlu2 %v1242_v26 }
 0x154   :  { %661 = vperm.xlu2 %1152, %v1292_v1  }
 0x156   :  { %1156 = vset.pattern.permute.xlu1 %v1240_v25 }
 0x157   :  { %707 = vperm.xlu1 %1156, %v1292_v1  }
 0x15c   :  { %1154 = vset.pattern.permute.xlu2 %v1244_v32  ;;  %v1267_v32 = vmov 71  }
 0x15d   :  { %681 = vperm.xlu2 %1154, %v1586_v22  }
 0x15f   :  { %1159 = vset.pattern.permute.xlu1 %v1243_v27 }
 0x160   :  { %735 = vperm.xlu1 %1159, %v1586_v22  }
 0x168   :  { %1161 = vset.pattern.permute.xlu1 %v1245_v37 }
 0x169   :  { %755 = vperm.xlu1 %1161, %v1586_v22  }
 0x16d   :  { %v1592_v38 = vpop.permute.xlu0 %559 }
 0x171   :  { %1164 = vset.pattern.permute.xlu1 %v1252_v42 }
 0x172   :  { %791 = vperm.xlu1 %1164, %v1586_v22  }
 0x17a   :  { %1167 = vset.pattern.permute.xlu1 %v1254_v58 }
 0x17b   :  { %827 = vperm.xlu1 %1167, %v1586_v22  }
 0x194   :  { %v500_v51 = vpop.xlane.xlu2 %499 }
 0x195   :  { %v510_v40 = vmul.f32 0.001953125, %v500_v51 }
 0x196   :  { %v509_v9 = vpop.xlane.xlu1 %508 }
 0x197   :  { %v512_v5 = vmul.f32 %v510_v40, %v510_v40  ;;  %v511_v12 = vmul.f32 0.001953125, %v509_v9 }
 0x199   :  { %v513_v2 = vsub.f32 %v511_v12, %v512_v5  ;;  %v1259_v12 = vmov 63  }
 0x19a   :  { %1170 = vset.pattern.permute.xlu1 %v1259_v12 }
 0x19b   :  { %v514_v34 = vmax.f32 %v513_v2, 0.0 }
 0x19d   :  { %v516_v14 = vadd.f32 1e-05, %v514_v34 }
 0x19f   :  { %1181 = vrsqrt.f32 %v516_v14  ;;  %vm523_vm11 = vweird.f32 %v516_v14 }
 0x1a5   :  { %v1182_v61 = vpop.eup %1181 }
 0x1a6   :  { %v518_v16 = vmul.f32 %v1182_v61, %v516_v14  ;;  %vm524_vm12 = vweird.f32 %v1182_v61 }
 0x1a7   :  { %vm525_vm10 = vmor %vm523_vm11, %vm524_vm12 }
 0x1a8   :  { %v519_v17 = vmul.f32 %v1182_v61, %v518_v16  ;;  %v1261_v16 = vmov 65  }
 0x1aa   :  { %v520_v18 = vmul.f32 0.5, %v519_v17 }
 0x1ac   :  { %v521_v55 = vsub.f32 1.5, %v520_v18  ;;  %v1262_v18 = vmov 66  }
 0x1ae   :  { %v522_v4 = vmul.f32 %v1182_v61, %v521_v55  ;;  %v1647_v17 = vpop.permute.xlu1 %605  ;;  %v1263_v55 = vmov 67  }
 0x1b0   :  { %v526_v47 = vsel %vm525_vm10, %v1182_v61, %v522_v4  ;;  %v1260_v61 = vmov 64   ;;  %v1264_v4 = vmov 70   ;;  %vm1899_vm10 = vcmp.lt.s32.totalorder %v1360_v33, 111 }
 0x1b1   :  { %v527_v20 = vmul.f32 %v526_v47, %v1573_v28  ;;  %vm1900_vm11 = vmmov %vm1899_vm10 }
 0x1b3   :  { %536 = vperm.xlu0 %1143, %v527_v20   ;;  %v528_v21 = vmul.f32 %v527_v20, %v510_v40  ;;  %v1258_v40 = vmov 62   ;;  %v1265_v20 = vmov 69  }
 0x1b7   :  { %v1654_v47 = vpop.permute.xlu1 %635 }
 0x1bb   :  { %530 = vrot.lane.b32.xlu0 %v528_v21, %s1202_s21 }
 0x1bc   :  { %1144 = vset.pattern.permute.xlu0 %v1238_v23 }
 0x1c0   :  { %v1663_v23 = vpop.permute.xlu1 %671 }
 0x1c3   :  { %579 = vperm.xlu0 %1144, %v1292_v1  }
 0x1cb   :  { %1147 = vset.pattern.permute.xlu0 %v1241_v53  ;;  %v1673_v53 = vpop.permute.xlu1 %707 }
 0x1cc   :  { %615 = vperm.xlu0 %1147, %v1292_v1   ;;  %v1246_v1 = vmov 48  }
 0x1cd   :  { %1155 = vset.pattern.permute.xlu2 %v1246_v1 }
 0x1ce   :  { %697 = vperm.xlu2 %1155, %v1586_v22  }
 0x1d3   :  { %v1682_v26 = vpop.permute.xlu1 %735 }
 0x1d4   :  { %1150 = vset.pattern.permute.xlu0 %v1192_v6  ;;  %v1248_v6 = vmov 53  }
 0x1d6   :  { %1158 = vset.pattern.permute.xlu2 %v1247_v43 }
 0x1d7   :  { %727 = vperm.xlu2 %1158, %v1586_v22  }
 0x1db   :  { %v1688_v37 = vpop.permute.xlu1 %755 }
 0x1df   :  { %1160 = vset.pattern.permute.xlu2 %v1248_v6 }
 0x1e0   :  { %745 = vperm.xlu2 %1160, %v1586_v22  }
 0x1e4   :  { %v1692_v43 = vpop.permute.xlu1 %791 }
 0x1e8   :  { %1163 = vset.pattern.permute.xlu2 %v1253_v57 }
 0x1e9   :  { %781 = vperm.xlu2 %1163, %v1586_v22  }
 0x1f1   :  { %1166 = vset.pattern.permute.xlu2 %v1255_v48 }
 0x1f2   :  { %811 = vperm.xlu2 %1166, %v1586_v22  }
 0x1fa   :  { %1169 = vset.pattern.permute.xlu2 %v1258_v40 }
 0x225   :  { %v537_v46 = vpop.permute.xlu0 %536 }
 0x226   :  { %v539_v9 = vmul.f32 %v537_v46, %v1542_v30  ;;  %v540_v5 = vmul.f32 %v537_v46, %v1544_v31  ;;  %v1622_v30 = vpop.permute.xlu2 %569 }
 0x22d   :  { %v531_v49 = vpop.permute.xlu0 %530 }
 0x22e   :  { %v533_v50 = vsub.f32 %v1573_v28, %v531_v49  ;;  %v1629_v31 = vpop.permute.xlu2 %589  ;;  %v1696_v49 = vpop.permute.xlu1 %827 }
 0x230   :  { %543 = vperm.xlu0 %1150, %v533_v50  }
 0x235   :  { %v1606_v63 = vpop.permute.xlu0 %579 }
 0x236   :  { %v1636_v15 = vpop.permute.xlu2 %625 }
 0x238   :  { %1151 = vset.pattern.permute.xlu0 %v1249_v52 }
 0x239   :  { %651 = vperm.xlu0 %1151, %v1586_v22  }
 0x23e   :  { %v1608_v51 = vpop.permute.xlu0 %615  ;;  %v1644_v0 = vpop.permute.xlu2 %661 }
 0x241   :  { %1157 = vset.pattern.permute.xlu0 %v1250_v54 }
 0x242   :  { %717 = vperm.xlu0 %1157, %v1586_v22  }
 0x246   :  { %v1650_v19 = vpop.permute.xlu2 %681 }
 0x24a   :  { %1162 = vset.pattern.permute.xlu0 %v1251_v11 }
 0x24b   :  { %765 = vperm.xlu0 %1162, %v1586_v22  }
 0x24e   :  { %v1661_v21 = vpop.permute.xlu2 %697 }
 0x253   :  { %1165 = vset.pattern.permute.xlu0 %v1256_v59 }
 0x254   :  { %801 = vperm.xlu0 %1165, %v1586_v22  }
 0x256   :  { %v1669_v25 = vpop.permute.xlu2 %727 }
 0x25c   :  { %1168 = vset.pattern.permute.xlu0 %v1257_v62 }
 0x2a2   :  { %v544_v2 = vpop.permute.xlu0 %543 }
 0x2a3   :  { %v546_v34 = vadd.f32 %v544_v2, %v539_v9  ;;  %v547_v13 = vadd.f32 %v544_v2, %v540_v5 }
 0x2a5   :  { %v1612_v29 = vmax.f32 %v546_v34, 0.0  ;;  %v1614_v14 = vmax.f32 %v547_v13, 0.0 }
 0x2a7   :  { %690 = vrot.lane.b32.xlu0 %v1614_v14, %s1202_s21  ;;  %552 = vrot.lane.b32.xlu1 %v1614_v14, %s1190_s16 }
 0x2a8   :  { %550 = vrot.lane.b32.xlu2 %v1612_v29, %s1190_s16 }
 0x2ab   :  { %v1694_v46 = vpop.permute.xlu0 %651 }
 0x2af   :  { %837 = vperm.xlu0 %1168, %v1586_v22   ;;  %596 = vrot.lane.b32.xlu1 %v1612_v29, %s1194_s19 }
 0x2b0   :  { %598 = vrot.lane.b32.xlu2 %v1614_v14, %s1194_s19 }
 0x2b4   :  { %v1698_v50 = vpop.permute.xlu0 %717 }
 0x2b7   :  { %1171 = vset.pattern.permute.xlu0 %v1260_v61  ;;  %644 = vrot.lane.b32.xlu1 %v1614_v14, %s1199_s20 }
 0x2b8   :  { %642 = vrot.lane.b32.xlu2 %v1612_v29, %s1199_s20  ;;  %873 = vperm.xlu0 %1171, %v1586_v22  }
 0x2bd   :  { %v1712_v13 = vpop.permute.xlu0 %765 }
 0x2bf   :  { %688 = vrot.lane.b32.xlu1 %v1612_v29, %s1202_s21 }
 0x2c0   :  { %847 = vperm.xlu2 %1169, %v1586_v22   ;;  %912 = vrot.lane.b32.xlu0 %v1614_v14, %s1221_s24 }
 0x2c1   :  { %1177 = vset.pattern.permute.xlu0 %v1264_v4 }
 0x2c7   :  { %857 = vperm.xlu1 %1170, %v1586_v22  }
 0x2c8   :  { %1172 = vset.pattern.permute.xlu2 %v1261_v16  ;;  %939 = vperm.xlu0 %1177, %v1586_v22  }
 0x2c9   :  { %883 = vperm.xlu2 %1172, %v1586_v22  }
 0x2cf   :  { %1173 = vset.pattern.permute.xlu1 %v1262_v18 }
 0x2d0   :  { %893 = vperm.xlu1 %1173, %v1586_v22   ;;  %1179 = vset.pattern.permute.xlu0 %v1189_v3  ;;  %v1677_v3 = vpop.permute.xlu2 %745 }
 0x2d1   :  { %1174 = vset.pattern.permute.xlu2 %v1263_v55 }
 0x2d2   :  { %903 = vperm.xlu2 %1174, %v1586_v22  }
 0x2d8   :  { %774 = vrot.lane.b32.xlu1 %v1614_v14, %s1214_s22  ;;  %v1684_v27 = vpop.permute.xlu2 %781 }
 0x2d9   :  { %1176 = vset.pattern.permute.xlu1 %v1265_v20 }
 0x2da   :  { %772 = vrot.lane.b32.xlu2 %v1612_v29, %s1214_s22 }
 0x2db   :  { %1175 = vset.pattern.permute.xlu2 %v1266_v24 }
 0x2e0   :  { %818 = vrot.lane.b32.xlu1 %v1612_v29, %s1219_s23  ;;  %v1690_v1 = vpop.permute.xlu2 %811 }
 0x2e2   :  { %820 = vrot.lane.b32.xlu2 %v1614_v14, %s1219_s23 }
 0x2e8   :  { %866 = vrot.lane.b32.xlu1 %v1614_v14, %s1225_s25 }
 0x2ea   :  { %864 = vrot.lane.b32.xlu2 %v1612_v29, %s1225_s25 }
 0x2f0   :  { %910 = vrot.lane.b32.xlu1 %v1612_v29, %s1221_s24 }
 0x2f2   :  { %919 = vperm.xlu2 %1175, %v1586_v22  }
 0x2f8   :  { %929 = vperm.xlu1 %1176, %v1586_v22  }
 0x2fa   :  { %1178 = vset.pattern.permute.xlu2 %v1267_v32 }
 0x2fb   :  { %949 = vperm.xlu2 %1178, %v1586_v22  }
 0x302   :  { %v551_v6 = vpop.permute.xlu2 %550 }
 0x30a   :  { %v599_v52 = vpop.permute.xlu2 %598 }
 0x312   :  { %v643_v45 = vpop.permute.xlu2 %642 }
 0x319   :  { %v553_v54 = vpop.permute.xlu1 %552 }
 0x31a   :  { %v554_v11 = vsel %vm78_vm2, %v551_v6, %v553_v54  ;;  %v555_v22 = vsel %vm78_vm2, %v553_v54, %v551_v6 }
 0x31b   :  { %v556_v42 = vsel %vm1392_vm4, %v555_v22, 0.0  ;;  %v557_v57 = vsel %vm1384_vm3, %v554_v11, 0.0 }
 0x31c   :  { %v566_v58 = vrot.slane %v556_v42, 6  ;;  %v567_v48 = vrot.slane %v557_v57, 6  ;;  %v576_v59 = vrot.slane %v556_v42, 4  ;;  %v577_v62 = vrot.slane %v557_v57, 4 }
 0x31d   :  { %v586_v40 = vrot.slane %v556_v42, 2  ;;  %v587_v9 = vrot.slane %v557_v57, 2  ;;  %v562_v5 = vmul.f32 %v1592_v38, %v556_v42  ;;  %v563_v12 = vmul.f32 %v1592_v38, %v557_v57 }
 0x31e   :  { %v572_v2 = vmul.f32 %v1622_v30, %v566_v58  ;;  %v573_v34 = vmul.f32 %v1622_v30, %v567_v48  ;;  %v582_v18 = vmul.f32 %v1606_v63, %v576_v59  ;;  %v583_v55 = vmul.f32 %v1606_v63, %v577_v62 }
 0x31f   :  { %v592_v4 = vmul.f32 %v1629_v31, %v586_v40  ;;  %v593_v20 = vmul.f32 %v1629_v31, %v587_v9 }
 0x320   :  { %v574_v61 = vadd.f32 %v572_v2, %v562_v5  ;;  %v575_v16 = vadd.f32 %v573_v34, %v563_v12  ;;  %v1728_v12 = vpop.permute.xlu0 %801  ;;  %v1730_v2 = vpop.permute.xlu2 %847 }
 0x321   :  { %v597_v24 = vpop.permute.xlu1 %596 }
 0x322   :  { %v584_v32 = vadd.f32 %v582_v18, %v574_v61  ;;  %v585_v38 = vadd.f32 %v583_v55, %v575_v16  ;;  %v600_v6 = vsel %vm127_vm5, %v597_v24, %v599_v52  ;;  %v601_v30 = vsel %vm127_vm5, %v599_v52, %v597_v24 }
 0x323   :  { %v602_v54 = vsel %vm58_vm0, %v601_v30, 0.0  ;;  %v609_v11 = vmul.f32 %v1647_v17, %v600_v6  ;;  %v613_v22 = vrot.slane %v600_v6, 6  ;;  %v623_v63 = vrot.slane %v600_v6, 4 }
 0x324   :  { %v594_v42 = vadd.f32 %v592_v4, %v584_v32  ;;  %v595_v57 = vadd.f32 %v593_v20, %v585_v38  ;;  %v608_v31 = vmul.f32 %v1647_v17, %v602_v54  ;;  %v612_v58 = vrot.slane %v602_v54, 6 }
 0x325   :  { %v619_v48 = vmul.f32 %v1608_v51, %v613_v22  ;;  %v622_v59 = vrot.slane %v602_v54, 4  ;;  %v632_v62 = vrot.slane %v602_v54, 2  ;;  %v633_v5 = vrot.slane %v600_v6, 2 }
 0x326   :  { %v610_v40 = vadd.f32 %v608_v31, %v594_v42  ;;  %v611_v9 = vadd.f32 %v609_v11, %v595_v57  ;;  %v618_v52 = vmul.f32 %v1608_v51, %v612_v58  ;;  %v629_v17 = vmul.f32 %v1636_v15, %v623_v63 }
 0x327   :  { %v628_v16 = vmul.f32 %v1636_v15, %v622_v59  ;;  %v638_v18 = vmul.f32 %v1654_v47, %v632_v62  ;;  %v639_v55 = vmul.f32 %v1654_v47, %v633_v5  ;;  %vm1890_vm0 = vcmp.lt.s32.totalorder %v1360_v33, 1 }
 0x328   :  { %v620_v34 = vadd.f32 %v618_v52, %v610_v40  ;;  %v621_v61 = vadd.f32 %v619_v48, %v611_v9  ;;  %v691_v59 = vpop.permute.xlu0 %690  ;;  %v1750_v5 = vpop.permute.xlu2 %883  ;;  %vm1891_vm2 = vmmov %vm1890_vm0  ;;  %vm1894_vm5 = vcmp.lt.s32.totalorder %v1360_v33, 113 }
 0x329   :  { %v645_v4 = vpop.permute.xlu1 %644 }
 0x32a   :  { %v630_v20 = vadd.f32 %v628_v16, %v620_v34  ;;  %v631_v24 = vadd.f32 %v629_v17, %v621_v61  ;;  %v646_v51 = vsel %vm174_vm7, %v643_v45, %v645_v4  ;;  %v647_v32 = vsel %vm174_vm7, %v645_v4, %v643_v45  ;;  %vm1895_vm7 = vmmov %vm1894_vm5 }
 0x32b   :  { %v648_v38 = vsel %vm1442_vm9, %v647_v32, 0.0  ;;  %v649_v6 = vsel %vm1434_vm8, %v646_v51, 0.0  ;;  %vm1898_vm9 = vcmp.lt.s32.totalorder %v1368_v36, 240 }
 0x32c   :  { %v641_v15 = vadd.f32 %v639_v55, %v631_v24  ;;  %v640_v30 = vadd.f32 %v638_v18, %v630_v20  ;;  %v654_v54 = vmul.f32 %v1694_v46, %v648_v38  ;;  %v655_v47 = vmul.f32 %v1694_v46, %v649_v6 }
 0x32d   :  { %v658_v11 = vrot.slane %v648_v38, 6  ;;  %v659_v22 = vrot.slane %v649_v6, 6  ;;  %v668_v63 = vrot.slane %v648_v38, 4  ;;  %v669_v42 = vrot.slane %v649_v6, 4 }
 0x32e   :  { %v656_v57 = vadd.f32 %v654_v54, %v640_v30  ;;  %v657_v31 = vadd.f32 %v655_v47, %v641_v15  ;;  %v678_v58 = vrot.slane %v648_v38, 2  ;;  %v679_v45 = vrot.slane %v649_v6, 2 }
 0x32f   :  { %v664_v39 = vmul.f32 %v1644_v0, %v658_v11  ;;  %v665_v48 = vmul.f32 %v1644_v0, %v659_v22  ;;  %v674_v9 = vmul.f32 %v1663_v23, %v668_v63  ;;  %v675_v52 = vmul.f32 %v1663_v23, %v669_v42 }
 0x330   :  { %v684_v34 = vmul.f32 %v1650_v19, %v678_v58  ;;  %v685_v61 = vmul.f32 %v1650_v19, %v679_v45  ;;  %v743_v58 = vrot.slane %v1614_v14, 6 }
 0x331   :  { %v666_v62 = vadd.f32 %v664_v39, %v656_v57  ;;  %v667_v40 = vadd.f32 %v665_v48, %v657_v31  ;;  %v689_v46 = vpop.permute.xlu1 %688  ;;  %v742_v31 = vrot.slane %v1612_v29, 6 }
 0x332   :  { %v692_v16 = vsel %vm1890_vm0, %v689_v46, %v691_v59  ;;  %v693_v0 = vsel %vm1891_vm2, %v691_v59, %v689_v46  ;;  %v752_v59 = vrot.slane %v1612_v29, 4  ;;  %v738_v46 = vmul.f32 %v1682_v26, %v1612_v29 }
 0x333   :  { %v676_v17 = vadd.f32 %v674_v9, %v666_v62  ;;  %v677_v18 = vadd.f32 %v675_v52, %v667_v40  ;;  %v694_v55 = vsel %vm1376_vm1, %v693_v0, 0.0  ;;  %v695_v23 = vsel %vm1384_vm3, %v692_v16, 0.0  ;;  %v1776_v40 = vpop.permute.xlu2 %903 }
 0x334   :  { %v700_v4 = vmul.f32 %v1661_v21, %v694_v55  ;;  %v701_v20 = vmul.f32 %v1661_v21, %v695_v23  ;;  %v704_v24 = vrot.slane %v694_v55, 6  ;;  %v705_v19 = vrot.slane %v695_v23, 6 }
 0x335   :  { %v686_v51 = vadd.f32 %v684_v34, %v676_v17  ;;  %v687_v32 = vadd.f32 %v685_v61, %v677_v18  ;;  %v714_v38 = vrot.slane %v694_v55, 4  ;;  %v715_v6 = vrot.slane %v695_v23, 4 }
 0x336   :  { %v710_v15 = vmul.f32 %v1673_v53, %v704_v24  ;;  %v711_v30 = vmul.f32 %v1673_v53, %v705_v19  ;;  %v724_v11 = vrot.slane %v694_v55, 2  ;;  %v725_v22 = vrot.slane %v695_v23, 2 }
 0x337   :  { %v702_v54 = vadd.f32 %v700_v4, %v686_v51  ;;  %v703_v47 = vadd.f32 %v701_v20, %v687_v32  ;;  %v720_v42 = vmul.f32 %v1698_v50, %v714_v38  ;;  %v721_v21 = vmul.f32 %v1698_v50, %v715_v6 }
 0x338   :  { %v730_v53 = vmul.f32 %v1669_v25, %v724_v11  ;;  %v731_v48 = vmul.f32 %v1669_v25, %v725_v22  ;;  %v753_v62 = vrot.slane %v1614_v14, 4  ;;  %v739_v50 = vmul.f32 %v1682_v26, %v1614_v14 }
 0x339   :  { %v712_v44 = vadd.f32 %v710_v15, %v702_v54  ;;  %v713_v63 = vadd.f32 %v711_v30, %v703_v47  ;;  %v1768_v57 = vpop.permute.xlu1 %857  ;;  %v748_v34 = vmul.f32 %v1677_v3, %v742_v31  ;;  %v749_v61 = vmul.f32 %v1677_v3, %v743_v58 }
 0x33a   :  { %v758_v0 = vmul.f32 %v1688_v37, %v752_v59  ;;  %v759_v17 = vmul.f32 %v1688_v37, %v753_v62  ;;  %v762_v19 = vrot.slane %v1612_v29, 2  ;;  %v763_v26 = vrot.slane %v1614_v14, 2  ;;  %v838_v14 = vpop.permute.xlu0 %837 }
 0x33b   :  { %v722_v45 = vadd.f32 %v720_v42, %v712_v44  ;;  %v723_v39 = vadd.f32 %v721_v21, %v713_v63  ;;  %v773_v24 = vpop.permute.xlu2 %772  ;;  %vm1892_vm3 = vcmp.lt.s32.totalorder %v1360_v33, 127 }
 0x33c   :  { %v768_v51 = vmul.f32 %v1712_v13, %v762_v19  ;;  %v769_v3 = vmul.f32 %v1712_v13, %v763_v26  ;;  %vm1893_vm4 = vmmov %vm1892_vm3 }
 0x33d   :  { %v732_v9 = vadd.f32 %v730_v53, %v722_v45  ;;  %v733_v52 = vadd.f32 %v731_v48, %v723_v39 }
 0x33f   :  { %v740_v16 = vadd.f32 %v738_v46, %v732_v9  ;;  %v741_v25 = vadd.f32 %v739_v50, %v733_v52 }
 0x341   :  { %v750_v18 = vadd.f32 %v748_v34, %v740_v16  ;;  %v751_v55 = vadd.f32 %v749_v61, %v741_v25 }
 0x342   :  { %v1786_v23 = vpop.permute.xlu1 %893 }
 0x343   :  { %v760_v4 = vadd.f32 %v758_v0, %v750_v18  ;;  %v761_v20 = vadd.f32 %v759_v17, %v751_v55  ;;  %v821_v39 = vpop.permute.xlu2 %820 }
 0x345   :  { %v770_v6 = vadd.f32 %v768_v51, %v760_v4  ;;  %v771_v15 = vadd.f32 %v769_v3, %v761_v20  ;;  %v874_v4 = vpop.permute.xlu0 %873 }
 0x34a   :  { %v775_v32 = vpop.permute.xlu1 %774 }
 0x34b   :  { %v776_v38 = vsel %vm1892_vm3, %v773_v24, %v775_v32  ;;  %v777_v37 = vsel %vm1893_vm4, %v775_v32, %v773_v24  ;;  %v865_v3 = vpop.permute.xlu2 %864 }
 0x34c   :  { %v778_v30 = vsel %vm1425_vm6, %v776_v38, 0.0  ;;  %v779_v29 = vsel %vm1434_vm8, %v777_v37, 0.0 }
 0x34d   :  { %v784_v54 = vmul.f32 %v1684_v27, %v778_v30  ;;  %v785_v13 = vmul.f32 %v1684_v27, %v779_v29  ;;  %v788_v47 = vrot.slane %v778_v30, 6  ;;  %v789_v11 = vrot.slane %v779_v29, 6 }
 0x34e   :  { %v798_v22 = vrot.slane %v778_v30, 4  ;;  %v799_v44 = vrot.slane %v779_v29, 4  ;;  %v808_v63 = vrot.slane %v778_v30, 2  ;;  %v809_v42 = vrot.slane %v779_v29, 2 }
 0x34f   :  { %v786_v21 = vadd.f32 %v784_v54, %v770_v6  ;;  %v787_v31 = vadd.f32 %v785_v13, %v771_v15  ;;  %v794_v58 = vmul.f32 %v1692_v43, %v788_v47  ;;  %v795_v45 = vmul.f32 %v1692_v43, %v789_v11 }
 0x350   :  { %v804_v48 = vmul.f32 %v1728_v12, %v798_v22  ;;  %v805_v59 = vmul.f32 %v1728_v12, %v799_v44  ;;  %v814_v27 = vmul.f32 %v1690_v1, %v808_v63  ;;  %v815_v62 = vmul.f32 %v1690_v1, %v809_v42 }
 0x351   :  { %v796_v60 = vadd.f32 %v794_v58, %v786_v21  ;;  %v797_v53 = vadd.f32 %v795_v45, %v787_v31 }
 0x352   :  { %v819_v50 = vpop.permute.xlu1 %818 }
 0x353   :  { %v806_v9 = vadd.f32 %v804_v48, %v796_v60  ;;  %v807_v52 = vadd.f32 %v805_v59, %v797_v53  ;;  %v822_v46 = vsel %vm1894_vm5, %v819_v50, %v821_v39  ;;  %v823_v43 = vsel %vm1895_vm7, %v821_v39, %v819_v50  ;;  %v913_v39 = vpop.permute.xlu0 %912 }
 0x354   :  { %v824_v34 = vsel %vm1376_vm1, %v822_v46, 0.0  ;;  %v825_v61 = vsel %vm1499_vm14, %v823_v43, 0.0  ;;  %vm1896_vm1 = vcmp.lt.s32.totalorder %v1360_v33, 112 }
 0x355   :  { %v816_v12 = vadd.f32 %v814_v27, %v806_v9  ;;  %v817_v16 = vadd.f32 %v815_v62, %v807_v52  ;;  %v830_v25 = vmul.f32 %v1696_v49, %v824_v34  ;;  %v831_v1 = vmul.f32 %v1696_v49, %v825_v61  ;;  %vm1897_vm8 = vmmov %vm1896_vm1  ;;  %v920_v62 = vpop.permute.xlu2 %919 }
 0x356   :  { %v834_v0 = vrot.slane %v824_v34, 6  ;;  %v835_v17 = vrot.slane %v825_v61, 6  ;;  %v844_v18 = vrot.slane %v824_v34, 4  ;;  %v845_v55 = vrot.slane %v825_v61, 4 }
 0x357   :  { %v832_v20 = vadd.f32 %v830_v25, %v816_v12  ;;  %v833_v24 = vadd.f32 %v831_v1, %v817_v16  ;;  %v854_v19 = vrot.slane %v824_v34, 2  ;;  %v855_v26 = vrot.slane %v825_v61, 2 }
 0x358   :  { %v840_v41 = vmul.f32 %v838_v14, %v834_v0  ;;  %v841_v51 = vmul.f32 %v838_v14, %v835_v17  ;;  %v850_v38 = vmul.f32 %v1730_v2, %v844_v18  ;;  %v851_v37 = vmul.f32 %v1730_v2, %v845_v55 }
 0x359   :  { %v860_v49 = vmul.f32 %v1768_v57, %v854_v19  ;;  %v861_v15 = vmul.f32 %v1768_v57, %v855_v26 }
 0x35a   :  { %v842_v10 = vadd.f32 %v840_v41, %v832_v20  ;;  %v843_v32 = vadd.f32 %v841_v51, %v833_v24  ;;  %v867_v6 = vpop.permute.xlu1 %866 }
 0x35b   :  { %v868_v30 = vsel %vm1896_vm1, %v865_v3, %v867_v6  ;;  %v869_v29 = vsel %vm1897_vm8, %v867_v6, %v865_v3  ;;  %v940_v55 = vpop.permute.xlu0 %939 }
 0x35c   :  { %v852_v54 = vadd.f32 %v850_v38, %v842_v10  ;;  %v853_v14 = vadd.f32 %v851_v37, %v843_v32  ;;  %v871_v13 = vsel %vm1898_vm9, %v869_v29, 0.0  ;;  %v876_v47 = vmul.f32 %v874_v4, %v868_v30 }
 0x35d   :  { %v877_v11 = vmul.f32 %v874_v4, %v871_v13  ;;  %v880_v22 = vrot.slane %v868_v30, 6  ;;  %v881_v2 = vrot.slane %v871_v13, 6  ;;  %v890_v42 = vrot.slane %v868_v30, 4  ;;  %v950_v41 = vpop.permute.xlu2 %949 }
 0x35e   :  { %v862_v44 = vadd.f32 %v860_v49, %v852_v54  ;;  %v863_v63 = vadd.f32 %v861_v15, %v853_v14  ;;  %v891_v21 = vrot.slane %v871_v13, 4  ;;  %v900_v60 = vrot.slane %v868_v30, 2 }
 0x35f   :  { %v886_v57 = vmul.f32 %v1750_v5, %v880_v22  ;;  %v887_v31 = vmul.f32 %v1750_v5, %v881_v2  ;;  %v901_v53 = vrot.slane %v871_v13, 2  ;;  %v896_v59 = vmul.f32 %v1786_v23, %v890_v42 }
 0x360   :  { %v878_v58 = vadd.f32 %v876_v47, %v862_v44  ;;  %v879_v45 = vadd.f32 %v877_v11, %v863_v63  ;;  %v897_v27 = vmul.f32 %v1786_v23, %v891_v21  ;;  %v906_v61 = vmul.f32 %v1776_v40, %v900_v60 }
 0x361   :  { %v907_v23 = vmul.f32 %v1776_v40, %v901_v53 }
 0x362   :  { %v888_v48 = vadd.f32 %v886_v57, %v878_v58  ;;  %v889_v36 = vadd.f32 %v887_v31, %v879_v45  ;;  %v911_v50 = vpop.permute.xlu1 %910 }
 0x363   :  { %v914_v9 = vsel %vm1899_vm10, %v911_v50, %v913_v39  ;;  %v915_v52 = vsel %vm1900_vm11, %v913_v39, %v911_v50 }
 0x364   :  { %v916_v5 = vsel %vm1425_vm6, %v914_v9, 0.0  ;;  %v917_v46 = vsel %vm1533_vm15, %v915_v52, 0.0  ;;  %v898_v43 = vadd.f32 %v896_v59, %v888_v48  ;;  %v899_v34 = vadd.f32 %v897_v27, %v889_v36 }
 0x365   :  { %v922_v12 = vmul.f32 %v920_v62, %v916_v5  ;;  %v923_v16 = vmul.f32 %v920_v62, %v917_v46  ;;  %v936_v0 = vrot.slane %v916_v5, 4  ;;  %v937_v17 = vrot.slane %v917_v46, 4 }
 0x366   :  { %v908_v25 = vadd.f32 %v906_v61, %v898_v43  ;;  %v909_v1 = vadd.f32 %v907_v23, %v899_v34  ;;  %v926_v33 = vrot.slane %v916_v5, 6  ;;  %v927_v18 = vrot.slane %v917_v46, 6 }
 0x367   :  { %v946_v56 = vrot.slane %v916_v5, 2  ;;  %v947_v4 = vrot.slane %v917_v46, 2  ;;  %v942_v51 = vmul.f32 %v940_v55, %v936_v0  ;;  %v943_v3 = vmul.f32 %v940_v55, %v937_v17  ;;  %v1186_v55 = vld [vmem:[%s1863_s0] sm:$0xff] }
 0x368   :  { %v924_v8 = vadd.f32 %v922_v12, %v908_v25  ;;  %v925_v24 = vadd.f32 %v923_v16, %v909_v1 }
 0x369   :  { %v952_v32 = vmul.f32 %v950_v41, %v946_v56  ;;  %v953_v38 = vmul.f32 %v950_v41, %v947_v4 }
 0x36a   :  { %v930_v20 = vpop.permute.xlu1 %929 }
 0x36b   :  { %v932_v19 = vmul.f32 %v930_v20, %v926_v33  ;;  %v933_v26 = vmul.f32 %v930_v20, %v927_v18 }
 0x36d   :  { %v934_v40 = vadd.f32 %v932_v19, %v924_v8  ;;  %v935_v10 = vadd.f32 %v933_v26, %v925_v24 }
 0x36f   :  { %v944_v37 = vadd.f32 %v942_v51, %v934_v40  ;;  %v945_v6 = vadd.f32 %v943_v3, %v935_v10 }
 0x371   :  { %v954_v49 = vadd.f32 %v952_v32, %v944_v37  ;;  %v955_v15 = vadd.f32 %v953_v38, %v945_v6 }
 0x373   :  { %v956_v30 = vrot.slane %v954_v49, 1  ;;  %v957_v29 = vrot.slane %v955_v15, 1  ;;  %v958_v54 = vrot.slane %v954_v49, 7  ;;  %v959_v14 = vrot.slane %v955_v15, 7 }
 0x374   :  { %v967_v11 = vmul.f32 %v954_v49, %v954_v49  ;;  %v968_v22 = vmul.f32 %v955_v15, %v955_v15 }
 0x375   :  { %v960_v13 = vsel %vm1546_vm13, %v956_v30, %v958_v54  ;;  %v961_v47 = vsel %vm1546_vm13, %v957_v29, %v959_v14 }
 0x376   :  { %v962_v2 = vadd.f32 %v960_v13, %v954_v49  ;;  %v963_v44 = vadd.f32 %v961_v47, %v955_v15  ;;  %v969_v63 = vmul.f32 %v960_v13, %v960_v13  ;;  %v970_v42 = vmul.f32 %v961_v47, %v961_v47 }
 0x378   :  { %v964_v21 = vadd.f32 %v963_v44, %v962_v2  ;;  %v971_v57 = vadd.f32 %v969_v63, %v967_v11  ;;  %v972_v31 = vadd.f32 %v970_v42, %v968_v22 }
 0x37a   :  { %965 = vadd.xlane.f32.xlu1 %v964_v21  ;;  %v973_v58 = vadd.f32 %v972_v31, %v971_v57 }
 0x37c   :  { %974 = vadd.xlane.f32.xlu2 %v973_v58 }
 0x3ed   :  { %v966_v45 = vpop.xlane.xlu1 %965 }
 0x3ee   :  { %v976_v39 = vmul.f32 0.001953125, %v966_v45 }
 0x3ef   :  { %v975_v60 = vpop.xlane.xlu2 %974 }
 0x3f0   :  { %v978_v53 = vmul.f32 %v976_v39, %v976_v39  ;;  %v977_v48 = vmul.f32 0.001953125, %v975_v60 }
 0x3f2   :  { %v979_v36 = vsub.f32 %v977_v48, %v978_v53 }
 0x3f4   :  { %v980_v35 = vmax.f32 %v979_v36, 0.0 }
 0x3f6   :  { %v981_v59 = vadd.f32 1e-05, %v980_v35 }
 0x3f8   :  { %1183 = vrsqrt.f32 %v981_v59  ;;  %vm988_vm12 = vweird.f32 %v981_v59 }
 0x3fe   :  { %v1184_v27 = vpop.eup %1183 }
 0x3ff   :  { %v983_v62 = vmul.f32 %v1184_v27, %v981_v59  ;;  %vm989_vm6 = vweird.f32 %v1184_v27 }
 0x400   :  { %vm990_vm13 = vmor %vm988_vm12, %vm989_vm6 }
 0x401   :  { %v984_v50 = vmul.f32 %v1184_v27, %v983_v62 }
 0x403   :  { %v985_v9 = vmul.f32 0.5, %v984_v50 }
 0x405   :  { %v986_v52 = vsub.f32 1.5, %v985_v9 }
 0x407   :  { %v987_v5 = vmul.f32 %v1184_v27, %v986_v52 }
 0x409   :  { %v991_v46 = vsel %vm990_vm13, %v1184_v27, %v987_v5 }
 0x40a   :  { %v992_v43 = vmul.f32 %v991_v46, %v1573_v28 }
 0x40c   :  { %v993_v34 = vmul.f32 %v992_v43, %v976_v39 }
 0x40e   :  { %995 = vrot.lane.b32.xlu0 %v993_v34, %s1202_s21 }
 0x416   :  { %1001 = vperm.xlu0 %1179, %v992_v43  }
 0x41e   :  { %1180 = vset.pattern.permute.xlu0 %v1193_v7  ;;  %v1187_v7 = vld [vmem:[%s1863_s0 + $0x8] sm:$0xff] }
 0x480   :  { %v996_v61 = vpop.permute.xlu0 %995 }
 0x481   :  { %v998_v23 = vsub.f32 %v1573_v28, %v996_v61 }
 0x483   :  { %1008 = vperm.xlu0 %1180, %v998_v23  }
 0x488   :  { %v1002_v12 = vpop.permute.xlu0 %1001 }
 0x489   :  { %v1004_v16 = vmul.f32 %v1002_v12, %v954_v49  ;;  %v1005_v25 = vmul.f32 %v1002_v12, %v955_v15 }
 0x4f5   :  { %v1009_v1 = vpop.permute.xlu0 %1008 }
 0x4f6   :  { %v1011_v0 = vadd.f32 %v1009_v1, %v1004_v16  ;;  %v1012_v17 = vadd.f32 %v1009_v1, %v1005_v25 }
 0x4f8   :  { %v1013_v33 = vmax.f32 %v1011_v0, 0.0  ;;  %v1014_v18 = vmax.f32 %v1012_v17, 0.0 }
 0x4fa   :  { %v1015_v56 = vadd.f32 %v1186_v55, %v1013_v33  ;;  %v1016_v4 = vadd.f32 %v1187_v7, %v1014_v18 }
 0x4fc   :  { %v1017_v28 = vmax.f32 %v1015_v56, 0.0  ;;  %v1018_v20 = vmax.f32 %v1016_v4, 0.0 }
 0x4fe   :  { %1019 = vst [vmem:[%s1865_s3] sm:$0xff] %v1017_v28 }
 0x4ff   :  { %1020 = vst [vmem:[%s1865_s3 + $0x8] sm:$0xff] %v1018_v20 }

</bundles_post_ra>
